<compile_context>
chip_gen: v7x
topology: tpu7x:2x2x1
jax: 0.10.0
libtpu: 0.0.40
codegen_flags: <defaults>
</compile_context>

<pallas_src>
import jax
import jax.numpy as jnp
from jax import lax
from jax.experimental import pallas as pl
from jax.experimental.pallas import tpu as pltpu

EPS = 1e-5


def _dot_cl(a, w):
    """Channels-last contraction over the last dim of `a`: (..., K) x (K, N) -> (..., N)."""
    return lax.dot_general(a, w,
                           dimension_numbers=(((a.ndim - 1,), (0,)), ((), ())),
                           preferred_element_type=jnp.float32)


# --------------------------------- kernel ---------------------------------- #

def _dynamic_embed_kernel(xcat_ref,
                          wcat1_ref, bcat1_ref,
                          w2a_ref, w2b_ref, w2c_ref, b2_ref,
                          w4a_ref, w4b_ref, w4c_ref, b4_ref,
                          wa_ref, ba_ref,
                          wf_ref, bf_ref,
                          out_ref,
                          hpad_ref, h2pad_ref):
    TM, L2, _ = xcat_ref.shape
    C12 = hpad_ref.shape[-1]        # 128 = [he(64) | ho(64)]
    C2 = h2pad_ref.shape[-1]        # 32

    xcat = xcat_ref[...]            # (TM, L2, 8): [xo[j-1], xe[j], xo[j], xe[j+1]] (2 ch each)

    # ---- stage 1: conv1(+BN1) on even & odd phases + res_conv, fused in ONE matmul ----------
    o1 = _dot_cl(xcat, wcat1_ref[...]) + bcat1_ref[...]          # (TM, L2, 128+CC)
    h_eo = jnp.maximum(o1[:, :, :C12], 0.0)                      # (TM, L2, 128) [he | ho]
    res = o1[:, :, C12:]                                         # (TM, L2, CC) res_conv (no ReLU)

    # Zero-padded scratch -> every shifted conv tap is a static ref slice (no concat-with-zeros).
    # Pad rows re-zeroed every step (see header: pl.when(pid==0) is unsafe on a 'parallel' axis).
    hpad_ref[:, 0:1, :] = jnp.zeros((TM, 1, C12), jnp.float32)
    hpad_ref[:, L2 + 1:L2 + 2, :] = jnp.zeros((TM, 1, C12), jnp.float32)
    hpad_ref[:, 1:L2 + 1, :] = h_eo

    # ---- stage 2: conv2(k4,s2) ∘ conv3(1x1) ∘ BN2, per-tap accumulated K=128 matmuls ---------
    #   tap rows: [he[j]|ho[j]] from registers; [·|ho[j-1]] and [he[j+1]|·] from padded scratch.
    h2 = _dot_cl(h_eo, w2b_ref[...])
    h2 = h2 + _dot_cl(hpad_ref[:, 0:L2, :], w2a_ref[...])        # j-1 taps (ho half active)
    h2 = h2 + _dot_cl(hpad_ref[:, 2:L2 + 2, :], w2c_ref[...])    # j+1 taps (he half active)
    h2 = jnp.maximum(h2 + b2_ref[...], 0.0)                      # (TM, L2, 32)
    # Dropout(0.2) -> eval-mode identity
    # TODO(synk): training-mode dropout (RNG mask) intentionally omitted; inference semantics.

    # ---- stage 3: conv4(k3,p1) + BN3 + ReLU, per-tap accumulated K=32 matmuls -----------------
    h2pad_ref[:, 0:1, :] = jnp.zeros((TM, 1, C2), jnp.float32)
    h2pad_ref[:, L2 + 1:L2 + 2, :] = jnp.zeros((TM, 1, C2), jnp.float32)
    h2pad_ref[:, 1:L2 + 1, :] = h2

    h4 = _dot_cl(h2, w4b_ref[...])
    h4 = h4 + _dot_cl(h2pad_ref[:, 0:L2, :], w4a_ref[...])
    h4 = h4 + _dot_cl(h2pad_ref[:, 2:L2 + 2, :], w4c_ref[...])
    h4 = jnp.maximum(h4 + b4_ref[...], 0.0)                      # (TM, L2, CC)

    xr = h4 + res                                                # conv_block output + residual

    # ---- attention pool: 1x1 conv -> softmax over length; denom folded into (TM,CC) scale ---
    a = _dot_cl(xr, wa_ref[...]) + ba_ref[...]
    a = a - jnp.max(a, axis=1, keepdims=True)
    e = jnp.exp(a)
    num = jnp.sum(xr * e, axis=1)                                # (TM, CC)
    den = jnp.sum(e, axis=1)                                     # (TM, CC), >= 1 by construction
    inv = pl.reciprocal(den, approx=True)                        # EUP vrcp
    inv = inv * (2.0 - den * inv)                                # one Newton step: keeps 5e-4 gate
    pooled = num * inv

    # ---- fc ----------------------------------------------------------------------------------
    out = _dot_cl(pooled, wf_ref[...]) + bf_ref[...]
    out_ref[...] = out.astype(out_ref.dtype)                     # E=32 lanes; lane-dense repack
                                                                 # deferred until M scales.


# ------------------------------ host wrapper -------------------------------- #

def _pick_tm(M):
    """Divisor of M, multiple of 8, close to min(128, M//2) -> >=2 grid steps when possible."""
    if M <= 8:
        return M
    cap = min(128, max(8, M // 2))
    tm = None
    for d in range(8, cap + 1, 8):
        if M % d == 0:
            tm = d
    return tm if tm is not None else M


def dynamic_embedding_pallas(x, p, conv_channel, embed_dim, tm=None):
    """x: (B, 2, Num_max, Width_max) float32 -> (B, Num_max, embed_dim)."""
    B, two, N, W = x.shape
    assert two == 2
    M, L = B * N, W
    L2 = L // 2
    assert L % 2 == 0
    CC, E = conv_channel, embed_dim

    if tm is None:
        tm = _pick_tm(M)
    assert M % tm == 0 and (tm % 8 == 0 or tm == M)

    # (B,2,N,W) -> (B,N,W,2) -> (M, L, 2): same symbol ordering as permute+reshape in PyTorch.
    x_sym = jnp.transpose(x, (0, 2, 3, 1)).reshape(M, L, 2).astype(jnp.float32)

    # Even/odd phase split + shifted-tap im2col on the host (pure layout prep).
    xe = x_sym[:, 0::2, :]                                       # x[2j]
    xo = x_sym[:, 1::2, :]                                       # x[2j+1]
    z2 = jnp.zeros((M, 1, 2), jnp.float32)
    xo_m1 = jnp.concatenate([z2, xo[:, :L2 - 1, :]], axis=1)     # x[2j-1]
    xe_p1 = jnp.concatenate([xe[:, 1:, :], z2], axis=1)          # x[2j+2]
    x_cat = jnp.concatenate([xo_m1, xe, xo, xe_p1], axis=-1)     # (M, L2, 8)

    def bn_fold(g, b, m, v):
        s = g / jnp.sqrt(v + EPS)
        return s, b - m * s

    s1, t1 = bn_fold(p['bn1_g'], p['bn1_b'], p['bn1_m'], p['bn1_v'])
    s2, t2 = bn_fold(p['bn2_g'], p['bn2_b'], p['bn2_m'], p['bn2_v'])
    s3, t3 = bn_fold(p['bn3_g'], p['bn3_b'], p['bn3_m'], p['bn3_v'])

    # conv1 (BN1-folded) and res_conv as channels-last taps
    w1t = jnp.transpose(p['w1'], (2, 1, 0))                      # (3, 2, 64)
    w1f = w1t * s1[None, None, :]
    b1f = p['b1'] * s1 + t1
    wrt = jnp.transpose(p['wr'], (2, 1, 0))                      # (4, 2, CC)

    # Stage-1 fused weight: rows follow x_cat lanes, columns [he(64) | ho(64) | res(CC)].
    z264 = jnp.zeros((2, 64), jnp.float32)
    wcat1 = jnp.concatenate([
        jnp.concatenate([w1f[0], z264,   wrt[0]], axis=1),
        jnp.concatenate([w1f[1], w1f[0], wrt[1]], axis=1),
        jnp.concatenate([w1f[2], w1f[1], wrt[2]], axis=1),
        jnp.concatenate([z264,   w1f[2], wrt[3]], axis=1),
    ], axis=0)                                                   # (8, 128+CC)
    bcat1 = jnp.concatenate([b1f, b1f, p['br']])[None, :]        # (1, 128+CC)

    # conv2(k4,s2) ∘ conv3(1x1) ∘ BN2 fold; split into per-tap K=128 weights over [he | ho].
    w2t = jnp.transpose(p['w2'], (2, 1, 0))                      # (4, 64, 64)
    w3t = p['w3'][:, :, 0].T                                     # (64, 32)
    w3s = w3t * s2[None, :]
    w2f = jnp.einsum('kio,oj->kij', w2t, w3s)                    # (4, 64, 32)
    z6432 = jnp.zeros((64, 32), jnp.float32)
    w2a = jnp.concatenate([z6432,  w2f[0]], axis=0)              # tap j-1: ho[j-1] only
    w2b = jnp.concatenate([w2f[1], w2f[2]], axis=0)              # tap j  : he[j] | ho[j]
    w2c = jnp.concatenate([w2f[3], z6432], axis=0)               # tap j+1: he[j+1] only
    b2f = ((p['b2'] @ w3t + p['b3']) * s2 + t2)[None, :]         # (1, 32)

    # conv4(k3,p1) + BN3 fold, per-tap K=32 weights.
    w4t = jnp.transpose(p['w4'], (2, 1, 0))                      # (3, 32, CC)
    w4f = w4t * s3[None, None, :]
    w4a, w4b, w4c = w4f[0], w4f[1], w4f[2]
    b4f = (p['b4'] * s3 + t3)[None, :]

    wat = p['wa'][:, :, 0].T                                     # (CC, CC)
    ba = p['ba'][None, :]
    wft = p['wf'].T                                              # (CC, E)
    bf = p['bf'][None, :]

    weights = [wcat1, bcat1, w2a, w2b, w2c, b2f, w4a, w4b, w4c, b4f, wat, ba, wft, bf]

    in_specs = ([pl.BlockSpec((tm, L2, 8), lambda i: (i, 0, 0))]
                + [pl.BlockSpec(w.shape, lambda i: (0, 0)) for w in weights])

    out = pl.pallas_call(
        _dynamic_embed_kernel,
        out_shape=jax.ShapeDtypeStruct((M, E), jnp.float32),
        grid=(M // tm,),
        in_specs=in_specs,
        out_specs=pl.BlockSpec((tm, E), lambda i: (i, 0)),
        scratch_shapes=[pltpu.VMEM((tm, L2 + 2, 128), jnp.float32),
                        pltpu.VMEM((tm, L2 + 2, 32), jnp.float32)],
        compiler_params=pltpu.CompilerParams(
            dimension_semantics=("parallel",),
            vmem_limit_bytes=32 * 1024 * 1024),
    )(x_cat, *weights)

    return out.reshape(B, N, E)


# ----------------------- deterministic synthetic params --------------------- #

def init_params(key, conv_channel, embed_dim):
    cc, e = conv_channel, embed_dim
    shapes = {
        'w1': (64, 2, 3), 'b1': (64,),
        'bn1_g': (64,), 'bn1_b': (64,), 'bn1_m': (64,), 'bn1_v': (64,),
        'w2': (64, 64, 4), 'b2': (64,),
        'w3': (32, 64, 1), 'b3': (32,),
        'bn2_g': (32,), 'bn2_b': (32,), 'bn2_m': (32,), 'bn2_v': (32,),
        'w4': (cc, 32, 3), 'b4': (cc,),
        'bn3_g': (cc,), 'bn3_b': (cc,), 'bn3_m': (cc,), 'bn3_v': (cc,),
        'wr': (cc, 2, 4), 'br': (cc,),
        'wa': (cc, cc, 1), 'ba': (cc,),
        'wf': (e, cc), 'bf': (e,),
    }
    keys = jax.random.split(key, len(shapes))
    p = {}
    for (name, shp), k in zip(shapes.items(), keys):
        if name.endswith('_v'):
            p[name] = jax.random.uniform(k, shp, jnp.float32, 0.5, 1.5)   # running var > 0
        elif name.endswith('_g'):
            p[name] = 1.0 + 0.1 * jax.random.normal(k, shp, jnp.float32)  # BN gamma
        else:
            p[name] = 0.1 * jax.random.normal(k, shp, jnp.float32)
    return p


# ----------------------------- pure-JAX reference --------------------------- #

def reference_forward(x, p, conv_channel, embed_dim):
    B, _, N, W = x.shape
    xs = jnp.transpose(x, (0, 2, 1, 3)).reshape(B * N, 2, W)     # (M, 2, L), PyTorch NCL

    def conv(h, w, b, stride=1, padding=0):
        y = lax.conv_general_dilated(h, w, (stride,), [(padding, padding)],
                                     dimension_numbers=('NCH', 'OIH', 'NCH'))
        return y + b[None, :, None]

    def bn(h, g, bb, m, v):
        return ((h - m[None, :, None]) / jnp.sqrt(v[None, :, None] + EPS)
                * g[None, :, None] + bb[None, :, None])

    h = jax.nn.relu(bn(conv(xs, p['w1'], p['b1'], 1, 1),
                       p['bn1_g'], p['bn1_b'], p['bn1_m'], p['bn1_v']))
    h = conv(h, p['w2'], p['b2'], 2, 1)
    h = jax.nn.relu(bn(conv(h, p['w3'], p['b3'], 1, 0),
                       p['bn2_g'], p['bn2_b'], p['bn2_m'], p['bn2_v']))
    h = jax.nn.relu(bn(conv(h, p['w4'], p['b4'], 1, 1),
                       p['bn3_g'], p['bn3_b'], p['bn3_m'], p['bn3_v']))
    res = conv(xs, p['wr'], p['br'], 2, 1)
    xr = h + res
    attn = jax.nn.softmax(conv(xr, p['wa'], p['ba'], 1, 0), axis=-1)
    pooled = jnp.sum(xr * attn, axis=-1)
    emb = pooled @ p['wf'].T + p['bf']
    return emb.reshape(B, N, embed_dim)


# ----------------------------------- main ----------------------------------- #

if __name__ == "__main__":
    B, Num_max, Width_max = 2, 8, 16
    conv_channel, embed_dim = 32, 32

    key = jax.random.PRNGKey(0)
    kx, kp = jax.random.split(key)
    x = jax.random.normal(kx, (B, 2, Num_max, Width_max), jnp.float32)
    params = init_params(kp, conv_channel, embed_dim)

    out = dynamic_embedding_pallas(x, params, conv_channel, embed_dim)
    out = jax.block_until_ready(out)

    ref = reference_forward(x, params, conv_channel, embed_dim)
    assert out.shape == (B, Num_max, embed_dim)
    err = float(jnp.max(jnp.abs(out - ref)))
    assert jnp.allclose(out, ref, rtol=5e-4, atol=5e-4), f"max abs err {err}"

    print("KERNEL_OK")
</pallas_src>

<mosaic_0001>
module attributes {stable_mosaic.version = 11 : i64} {
  func.func @_dynamic_embed_kernel(%arg0: i32, %arg1: memref<8x8x8xf32, #tpu.memory_space<vmem>>, %arg2: memref<8x160xf32, #tpu.memory_space<vmem>>, %arg3: memref<1x160xf32, #tpu.memory_space<vmem>>, %arg4: memref<128x32xf32, #tpu.memory_space<vmem>>, %arg5: memref<128x32xf32, #tpu.memory_space<vmem>>, %arg6: memref<128x32xf32, #tpu.memory_space<vmem>>, %arg7: memref<1x32xf32, #tpu.memory_space<vmem>>, %arg8: memref<32x32xf32, #tpu.memory_space<vmem>>, %arg9: memref<32x32xf32, #tpu.memory_space<vmem>>, %arg10: memref<32x32xf32, #tpu.memory_space<vmem>>, %arg11: memref<1x32xf32, #tpu.memory_space<vmem>>, %arg12: memref<32x32xf32, #tpu.memory_space<vmem>>, %arg13: memref<1x32xf32, #tpu.memory_space<vmem>>, %arg14: memref<32x32xf32, #tpu.memory_space<vmem>>, %arg15: memref<1x32xf32, #tpu.memory_space<vmem>>, %arg16: memref<8x32xf32, #tpu.memory_space<vmem>>, %arg17: memref<8x10x128xf32, #tpu.memory_space<vmem>>, %arg18: memref<8x10x32xf32, #tpu.memory_space<vmem>>) attributes {dimension_semantics = [#tpu.dimension_semantics<parallel>], iteration_bounds = array<i64: 2>, scalar_prefetch = 0 : i64, scratch_operands = 2 : i64, tpu.core_type = #tpu.core_type<tc>, window_params = [{transform_indices = @transform_0, window_bounds = array<i64: 8, 8, 8>}, {pipeline_mode = #tpu.pipeline_mode<synchronous>, transform_indices = @transform_1, window_bounds = array<i64: 8, 160>}, {pipeline_mode = #tpu.pipeline_mode<synchronous>, transform_indices = @transform_2, window_bounds = array<i64: 1, 160>}, {pipeline_mode = #tpu.pipeline_mode<synchronous>, transform_indices = @transform_3, window_bounds = array<i64: 128, 32>}, {pipeline_mode = #tpu.pipeline_mode<synchronous>, transform_indices = @transform_4, window_bounds = array<i64: 128, 32>}, {pipeline_mode = #tpu.pipeline_mode<synchronous>, transform_indices = @transform_5, window_bounds = array<i64: 128, 32>}, {pipeline_mode = #tpu.pipeline_mode<synchronous>, transform_indices = @transform_6, window_bounds = array<i64: 1, 32>}, {pipeline_mode = #tpu.pipeline_mode<synchronous>, transform_indices = @transform_7, window_bounds = array<i64: 32, 32>}, {pipeline_mode = #tpu.pipeline_mode<synchronous>, transform_indices = @transform_8, window_bounds = array<i64: 32, 32>}, {pipeline_mode = #tpu.pipeline_mode<synchronous>, transform_indices = @transform_9, window_bounds = array<i64: 32, 32>}, {pipeline_mode = #tpu.pipeline_mode<synchronous>, transform_indices = @transform_10, window_bounds = array<i64: 1, 32>}, {pipeline_mode = #tpu.pipeline_mode<synchronous>, transform_indices = @transform_11, window_bounds = array<i64: 32, 32>}, {pipeline_mode = #tpu.pipeline_mode<synchronous>, transform_indices = @transform_12, window_bounds = array<i64: 1, 32>}, {pipeline_mode = #tpu.pipeline_mode<synchronous>, transform_indices = @transform_13, window_bounds = array<i64: 32, 32>}, {pipeline_mode = #tpu.pipeline_mode<synchronous>, transform_indices = @transform_14, window_bounds = array<i64: 1, 32>}, {transform_indices = @transform_15, window_bounds = array<i64: 8, 32>}]} {
    %c0 = arith.constant 0 : index
    %c0_0 = arith.constant 0 : index
    %c0_1 = arith.constant 0 : index
    %0 = vector.load %arg1[%c0, %c0_0, %c0_1] : memref<8x8x8xf32, #tpu.memory_space<vmem>>, vector<8x8x8xf32>
    %c0_2 = arith.constant 0 : index
    %c0_3 = arith.constant 0 : index
    %1 = vector.load %arg2[%c0_2, %c0_3] : memref<8x160xf32, #tpu.memory_space<vmem>>, vector<8x160xf32>
    %cst = arith.constant dense<0.000000e+00> : vector<8x8x160xf32>
    %2 = tpu.matmul %0, %1, %cst {dimension_numbers = #tpu.dot_dimension_numbers<[2], [0], [0, 1], [1], [0, 0, 0, 1, 1, 1], [], []>} : vector<8x8x8xf32>, vector<8x160xf32>, vector<8x8x160xf32> -> vector<8x8x160xf32>
    %c0_4 = arith.constant 0 : index
    %c0_5 = arith.constant 0 : index
    %3 = vector.load %arg3[%c0_4, %c0_5] : memref<1x160xf32, #tpu.memory_space<vmem>>, vector<1x160xf32>
    %4 = vector.shape_cast %3 : vector<1x160xf32> to vector<1x1x160xf32>
    %5 = vector.broadcast %4 : vector<1x1x160xf32> to vector<8x8x160xf32>
    %6 = arith.addf %2, %5 : vector<8x8x160xf32>
    %7 = vector.extract_strided_slice %6 {offsets = [0, 0, 0], sizes = [8, 8, 128], strides = [1, 1, 1]} : vector<8x8x160xf32> to vector<8x8x128xf32>
    %cst_6 = arith.constant 0.000000e+00 : f32
    %8 = vector.broadcast %cst_6 : f32 to vector<8x8x128xf32>
    %9 = arith.maximumf %7, %8 : vector<8x8x128xf32>
    %10 = vector.extract_strided_slice %6 {offsets = [0, 0, 128], sizes = [8, 8, 32], strides = [1, 1, 1]} : vector<8x8x160xf32> to vector<8x8x32xf32>
    %cst_7 = arith.constant 0.000000e+00 : f32
    %11 = vector.broadcast %cst_7 : f32 to vector<8x1x128xf32>
    %c0_8 = arith.constant 0 : index
    %c0_9 = arith.constant 0 : index
    %c0_10 = arith.constant 0 : index
    %12 = vector.load %arg17[%c0_8, %c0_9, %c0_10] : memref<8x10x128xf32, #tpu.memory_space<vmem>>, vector<8x1x128xf32>
    tpu.vector_store %arg17[%c0_8, %c0_9, %c0_10], %11 {strides = array<i32>} : memref<8x10x128xf32, #tpu.memory_space<vmem>>, vector<8x1x128xf32>,
    %cst_11 = arith.constant 0.000000e+00 : f32
    %13 = vector.broadcast %cst_11 : f32 to vector<8x1x128xf32>
    %c0_12 = arith.constant 0 : index
    %c9 = arith.constant 9 : index
    %c0_13 = arith.constant 0 : index
    %14 = vector.load %arg17[%c0_12, %c9, %c0_13] : memref<8x10x128xf32, #tpu.memory_space<vmem>>, vector<8x1x128xf32>
    tpu.vector_store %arg17[%c0_12, %c9, %c0_13], %13 {strides = array<i32>} : memref<8x10x128xf32, #tpu.memory_space<vmem>>, vector<8x1x128xf32>,
    %c0_14 = arith.constant 0 : index
    %c1 = arith.constant 1 : index
    %c0_15 = arith.constant 0 : index
    %15 = vector.load %arg17[%c0_14, %c1, %c0_15] : memref<8x10x128xf32, #tpu.memory_space<vmem>>, vector<8x8x128xf32>
    tpu.vector_store %arg17[%c0_14, %c1, %c0_15], %9 {strides = array<i32>} : memref<8x10x128xf32, #tpu.memory_space<vmem>>, vector<8x8x128xf32>,
    %c0_16 = arith.constant 0 : index
    %c0_17 = arith.constant 0 : index
    %16 = vector.load %arg5[%c0_16, %c0_17] : memref<128x32xf32, #tpu.memory_space<vmem>>, vector<128x32xf32>
    %cst_18 = arith.constant dense<0.000000e+00> : vector<8x8x32xf32>
    %17 = tpu.matmul %9, %16, %cst_18 {dimension_numbers = #tpu.dot_dimension_numbers<[2], [0], [0, 1], [1], [0, 0, 0, 1, 1, 1], [], []>} : vector<8x8x128xf32>, vector<128x32xf32>, vector<8x8x32xf32> -> vector<8x8x32xf32>
    %c0_19 = arith.constant 0 : index
    %c0_20 = arith.constant 0 : index
    %c0_21 = arith.constant 0 : index
    %18 = vector.load %arg17[%c0_19, %c0_20, %c0_21] : memref<8x10x128xf32, #tpu.memory_space<vmem>>, vector<8x8x128xf32>
    %c0_22 = arith.constant 0 : index
    %c0_23 = arith.constant 0 : index
    %19 = vector.load %arg4[%c0_22, %c0_23] : memref<128x32xf32, #tpu.memory_space<vmem>>, vector<128x32xf32>
    %cst_24 = arith.constant dense<0.000000e+00> : vector<8x8x32xf32>
    %20 = tpu.matmul %18, %19, %cst_24 {dimension_numbers = #tpu.dot_dimension_numbers<[2], [0], [0, 1], [1], [0, 0, 0, 1, 1, 1], [], []>} : vector<8x8x128xf32>, vector<128x32xf32>, vector<8x8x32xf32> -> vector<8x8x32xf32>
    %21 = arith.addf %17, %20 : vector<8x8x32xf32>
    %c0_25 = arith.constant 0 : index
    %c2 = arith.constant 2 : index
    %c0_26 = arith.constant 0 : index
    %22 = vector.load %arg17[%c0_25, %c2, %c0_26] : memref<8x10x128xf32, #tpu.memory_space<vmem>>, vector<8x8x128xf32>
    %c0_27 = arith.constant 0 : index
    %c0_28 = arith.constant 0 : index
    %23 = vector.load %arg6[%c0_27, %c0_28] : memref<128x32xf32, #tpu.memory_space<vmem>>, vector<128x32xf32>
    %cst_29 = arith.constant dense<0.000000e+00> : vector<8x8x32xf32>
    %24 = tpu.matmul %22, %23, %cst_29 {dimension_numbers = #tpu.dot_dimension_numbers<[2], [0], [0, 1], [1], [0, 0, 0, 1, 1, 1], [], []>} : vector<8x8x128xf32>, vector<128x32xf32>, vector<8x8x32xf32> -> vector<8x8x32xf32>
    %25 = arith.addf %21, %24 : vector<8x8x32xf32>
    %c0_30 = arith.constant 0 : index
    %c0_31 = arith.constant 0 : index
    %26 = vector.load %arg7[%c0_30, %c0_31] : memref<1x32xf32, #tpu.memory_space<vmem>>, vector<1x32xf32>
    %27 = vector.shape_cast %26 : vector<1x32xf32> to vector<1x1x32xf32>
    %28 = vector.broadcast %27 : vector<1x1x32xf32> to vector<8x8x32xf32>
    %29 = arith.addf %25, %28 : vector<8x8x32xf32>
    %cst_32 = arith.constant 0.000000e+00 : f32
    %30 = vector.broadcast %cst_32 : f32 to vector<8x8x32xf32>
    %31 = arith.maximumf %29, %30 : vector<8x8x32xf32>
    %cst_33 = arith.constant 0.000000e+00 : f32
    %32 = vector.broadcast %cst_33 : f32 to vector<8x1x32xf32>
    %c0_34 = arith.constant 0 : index
    %c0_35 = arith.constant 0 : index
    %c0_36 = arith.constant 0 : index
    %33 = vector.load %arg18[%c0_34, %c0_35, %c0_36] : memref<8x10x32xf32, #tpu.memory_space<vmem>>, vector<8x1x32xf32>
    tpu.vector_store %arg18[%c0_34, %c0_35, %c0_36], %32 {strides = array<i32>} : memref<8x10x32xf32, #tpu.memory_space<vmem>>, vector<8x1x32xf32>,
    %cst_37 = arith.constant 0.000000e+00 : f32
    %34 = vector.broadcast %cst_37 : f32 to vector<8x1x32xf32>
    %c0_38 = arith.constant 0 : index
    %c9_39 = arith.constant 9 : index
    %c0_40 = arith.constant 0 : index
    %35 = vector.load %arg18[%c0_38, %c9_39, %c0_40] : memref<8x10x32xf32, #tpu.memory_space<vmem>>, vector<8x1x32xf32>
    tpu.vector_store %arg18[%c0_38, %c9_39, %c0_40], %34 {strides = array<i32>} : memref<8x10x32xf32, #tpu.memory_space<vmem>>, vector<8x1x32xf32>,
    %c0_41 = arith.constant 0 : index
    %c1_42 = arith.constant 1 : index
    %c0_43 = arith.constant 0 : index
    %36 = vector.load %arg18[%c0_41, %c1_42, %c0_43] : memref<8x10x32xf32, #tpu.memory_space<vmem>>, vector<8x8x32xf32>
    tpu.vector_store %arg18[%c0_41, %c1_42, %c0_43], %31 {strides = array<i32>} : memref<8x10x32xf32, #tpu.memory_space<vmem>>, vector<8x8x32xf32>,
    %c0_44 = arith.constant 0 : index
    %c0_45 = arith.constant 0 : index
    %37 = vector.load %arg9[%c0_44, %c0_45] : memref<32x32xf32, #tpu.memory_space<vmem>>, vector<32x32xf32>
    %cst_46 = arith.constant dense<0.000000e+00> : vector<8x8x32xf32>
    %38 = tpu.matmul %31, %37, %cst_46 {dimension_numbers = #tpu.dot_dimension_numbers<[2], [0], [0, 1], [1], [0, 0, 0, 1, 1, 1], [], []>} : vector<8x8x32xf32>, vector<32x32xf32>, vector<8x8x32xf32> -> vector<8x8x32xf32>
    %c0_47 = arith.constant 0 : index
    %c0_48 = arith.constant 0 : index
    %c0_49 = arith.constant 0 : index
    %39 = vector.load %arg18[%c0_47, %c0_48, %c0_49] : memref<8x10x32xf32, #tpu.memory_space<vmem>>, vector<8x8x32xf32>
    %c0_50 = arith.constant 0 : index
    %c0_51 = arith.constant 0 : index
    %40 = vector.load %arg8[%c0_50, %c0_51] : memref<32x32xf32, #tpu.memory_space<vmem>>, vector<32x32xf32>
    %cst_52 = arith.constant dense<0.000000e+00> : vector<8x8x32xf32>
    %41 = tpu.matmul %39, %40, %cst_52 {dimension_numbers = #tpu.dot_dimension_numbers<[2], [0], [0, 1], [1], [0, 0, 0, 1, 1, 1], [], []>} : vector<8x8x32xf32>, vector<32x32xf32>, vector<8x8x32xf32> -> vector<8x8x32xf32>
    %42 = arith.addf %38, %41 : vector<8x8x32xf32>
    %c0_53 = arith.constant 0 : index
    %c2_54 = arith.constant 2 : index
    %c0_55 = arith.constant 0 : index
    %43 = vector.load %arg18[%c0_53, %c2_54, %c0_55] : memref<8x10x32xf32, #tpu.memory_space<vmem>>, vector<8x8x32xf32>
    %c0_56 = arith.constant 0 : index
    %c0_57 = arith.constant 0 : index
    %44 = vector.load %arg10[%c0_56, %c0_57] : memref<32x32xf32, #tpu.memory_space<vmem>>, vector<32x32xf32>
    %cst_58 = arith.constant dense<0.000000e+00> : vector<8x8x32xf32>
    %45 = tpu.matmul %43, %44, %cst_58 {dimension_numbers = #tpu.dot_dimension_numbers<[2], [0], [0, 1], [1], [0, 0, 0, 1, 1, 1], [], []>} : vector<8x8x32xf32>, vector<32x32xf32>, vector<8x8x32xf32> -> vector<8x8x32xf32>
    %46 = arith.addf %42, %45 : vector<8x8x32xf32>
    %c0_59 = arith.constant 0 : index
    %c0_60 = arith.constant 0 : index
    %47 = vector.load %arg11[%c0_59, %c0_60] : memref<1x32xf32, #tpu.memory_space<vmem>>, vector<1x32xf32>
    %48 = vector.shape_cast %47 : vector<1x32xf32> to vector<1x1x32xf32>
    %49 = vector.broadcast %48 : vector<1x1x32xf32> to vector<8x8x32xf32>
    %50 = arith.addf %46, %49 : vector<8x8x32xf32>
    %cst_61 = arith.constant 0.000000e+00 : f32
    %51 = vector.broadcast %cst_61 : f32 to vector<8x8x32xf32>
    %52 = arith.maximumf %50, %51 : vector<8x8x32xf32>
    %53 = arith.addf %52, %10 : vector<8x8x32xf32>
    %c0_62 = arith.constant 0 : index
    %c0_63 = arith.constant 0 : index
    %54 = vector.load %arg12[%c0_62, %c0_63] : memref<32x32xf32, #tpu.memory_space<vmem>>, vector<32x32xf32>
    %cst_64 = arith.constant dense<0.000000e+00> : vector<8x8x32xf32>
    %55 = tpu.matmul %53, %54, %cst_64 {dimension_numbers = #tpu.dot_dimension_numbers<[2], [0], [0, 1], [1], [0, 0, 0, 1, 1, 1], [], []>} : vector<8x8x32xf32>, vector<32x32xf32>, vector<8x8x32xf32> -> vector<8x8x32xf32>
    %c0_65 = arith.constant 0 : index
    %c0_66 = arith.constant 0 : index
    %56 = vector.load %arg13[%c0_65, %c0_66] : memref<1x32xf32, #tpu.memory_space<vmem>>, vector<1x32xf32>
    %57 = vector.shape_cast %56 : vector<1x32xf32> to vector<1x1x32xf32>
    %58 = vector.broadcast %57 : vector<1x1x32xf32> to vector<8x8x32xf32>
    %59 = arith.addf %55, %58 : vector<8x8x32xf32>
    %cst_67 = arith.constant dense<0xFF800000> : vector<8x32xf32>
    %60 = vector.multi_reduction <maximumf>, %59, %cst_67 [1] : vector<8x8x32xf32> to vector<8x32xf32>
    %61 = vector.shape_cast %60 : vector<8x32xf32> to vector<8x1x32xf32>
    %62 = vector.broadcast %61 : vector<8x1x32xf32> to vector<8x8x32xf32>
    %63 = arith.subf %59, %62 : vector<8x8x32xf32>
    %64 = math.exp %63 : vector<8x8x32xf32>
    %65 = arith.mulf %53, %64 : vector<8x8x32xf32>
    %cst_68 = arith.constant dense<0.000000e+00> : vector<8x32xf32>
    %66 = vector.multi_reduction <add>, %65, %cst_68 [1] : vector<8x8x32xf32> to vector<8x32xf32>
    %cst_69 = arith.constant dense<0.000000e+00> : vector<8x32xf32>
    %67 = vector.multi_reduction <add>, %64, %cst_69 [1] : vector<8x8x32xf32> to vector<8x32xf32>
    %68 = tpu.reciprocal %67 {approx = true} : vector<8x32xf32> -> vector<8x32xf32>
    %69 = arith.mulf %67, %68 : vector<8x32xf32>
    %cst_70 = arith.constant 2.000000e+00 : f32
    %70 = vector.broadcast %cst_70 : f32 to vector<8x32xf32>
    %71 = arith.subf %70, %69 : vector<8x32xf32>
    %72 = arith.mulf %68, %71 : vector<8x32xf32>
    %73 = arith.mulf %66, %72 : vector<8x32xf32>
    %c0_71 = arith.constant 0 : index
    %c0_72 = arith.constant 0 : index
    %74 = vector.load %arg14[%c0_71, %c0_72] : memref<32x32xf32, #tpu.memory_space<vmem>>, vector<32x32xf32>
    %cst_73 = arith.constant dense<0.000000e+00> : vector<8x32xf32>
    %75 = tpu.matmul %73, %74, %cst_73 {dimension_numbers = #tpu.dot_dimension_numbers<[1], [0], [0], [1], [0, 0, 1, 1], [], []>} : vector<8x32xf32>, vector<32x32xf32>, vector<8x32xf32> -> vector<8x32xf32>
    %c0_74 = arith.constant 0 : index
    %c0_75 = arith.constant 0 : index
    %76 = vector.load %arg15[%c0_74, %c0_75] : memref<1x32xf32, #tpu.memory_space<vmem>>, vector<1x32xf32>
    %77 = vector.broadcast %76 : vector<1x32xf32> to vector<8x32xf32>
    %78 = arith.addf %75, %77 : vector<8x32xf32>
    %c0_76 = arith.constant 0 : index
    %c0_77 = arith.constant 0 : index
    %79 = vector.load %arg16[%c0_76, %c0_77] : memref<8x32xf32, #tpu.memory_space<vmem>>, vector<8x32xf32>
    tpu.vector_store %arg16[%c0_76, %c0_77], %78 {strides = array<i32>} : memref<8x32xf32, #tpu.memory_space<vmem>>, vector<8x32xf32>,
    return
  }
  func.func @transform_0(%arg0: i32) -> (i32, i32, i32) {
    %c0_i32 = arith.constant 0 : i32
    %c0_i32_0 = arith.constant 0 : i32
    %c0_i32_1 = arith.constant 0 : i32
    return %arg0, %c0_i32, %c0_i32_0 : i32, i32, i32
  }
  func.func @transform_1(%arg0: i32) -> (i32, i32) {
    %c0_i32 = arith.constant 0 : i32
    %c0_i32_0 = arith.constant 0 : i32
    %c0_i32_1 = arith.constant 0 : i32
    return %c0_i32, %c0_i32_0 : i32, i32
  }
  func.func @transform_2(%arg0: i32) -> (i32, i32) {
    %c0_i32 = arith.constant 0 : i32
    %c0_i32_0 = arith.constant 0 : i32
    %c0_i32_1 = arith.constant 0 : i32
    return %c0_i32, %c0_i32_0 : i32, i32
  }
  func.func @transform_3(%arg0: i32) -> (i32, i32) {
    %c0_i32 = arith.constant 0 : i32
    %c0_i32_0 = arith.constant 0 : i32
    %c0_i32_1 = arith.constant 0 : i32
    return %c0_i32, %c0_i32_0 : i32, i32
  }
  func.func @transform_4(%arg0: i32) -> (i32, i32) {
    %c0_i32 = arith.constant 0 : i32
    %c0_i32_0 = arith.constant 0 : i32
    %c0_i32_1 = arith.constant 0 : i32
    return %c0_i32, %c0_i32_0 : i32, i32
  }
  func.func @transform_5(%arg0: i32) -> (i32, i32) {
    %c0_i32 = arith.constant 0 : i32
    %c0_i32_0 = arith.constant 0 : i32
    %c0_i32_1 = arith.constant 0 : i32
    return %c0_i32, %c0_i32_0 : i32, i32
  }
  func.func @transform_6(%arg0: i32) -> (i32, i32) {
    %c0_i32 = arith.constant 0 : i32
    %c0_i32_0 = arith.constant 0 : i32
    %c0_i32_1 = arith.constant 0 : i32
    return %c0_i32, %c0_i32_0 : i32, i32
  }
  func.func @transform_7(%arg0: i32) -> (i32, i32) {
    %c0_i32 = arith.constant 0 : i32
    %c0_i32_0 = arith.constant 0 : i32
    %c0_i32_1 = arith.constant 0 : i32
    return %c0_i32, %c0_i32_0 : i32, i32
  }
  func.func @transform_8(%arg0: i32) -> (i32, i32) {
    %c0_i32 = arith.constant 0 : i32
    %c0_i32_0 = arith.constant 0 : i32
    %c0_i32_1 = arith.constant 0 : i32
    return %c0_i32, %c0_i32_0 : i32, i32
  }
  func.func @transform_9(%arg0: i32) -> (i32, i32) {
    %c0_i32 = arith.constant 0 : i32
    %c0_i32_0 = arith.constant 0 : i32
    %c0_i32_1 = arith.constant 0 : i32
    return %c0_i32, %c0_i32_0 : i32, i32
  }
  func.func @transform_10(%arg0: i32) -> (i32, i32) {
    %c0_i32 = arith.constant 0 : i32
    %c0_i32_0 = arith.constant 0 : i32
    %c0_i32_1 = arith.constant 0 : i32
    return %c0_i32, %c0_i32_0 : i32, i32
  }
  func.func @transform_11(%arg0: i32) -> (i32, i32) {
    %c0_i32 = arith.constant 0 : i32
    %c0_i32_0 = arith.constant 0 : i32
    %c0_i32_1 = arith.constant 0 : i32
    return %c0_i32, %c0_i32_0 : i32, i32
  }
  func.func @transform_12(%arg0: i32) -> (i32, i32) {
    %c0_i32 = arith.constant 0 : i32
    %c0_i32_0 = arith.constant 0 : i32
    %c0_i32_1 = arith.constant 0 : i32
    return %c0_i32, %c0_i32_0 : i32, i32
  }
  func.func @transform_13(%arg0: i32) -> (i32, i32) {
    %c0_i32 = arith.constant 0 : i32
    %c0_i32_0 = arith.constant 0 : i32
    %c0_i32_1 = arith.constant 0 : i32
    return %c0_i32, %c0_i32_0 : i32, i32
  }
  func.func @transform_14(%arg0: i32) -> (i32, i32) {
    %c0_i32 = arith.constant 0 : i32
    %c0_i32_0 = arith.constant 0 : i32
    %c0_i32_1 = arith.constant 0 : i32
    return %c0_i32, %c0_i32_0 : i32, i32
  }
  func.func @transform_15(%arg0: i32) -> (i32, i32) {
    %c0_i32 = arith.constant 0 : i32
    %c0_i32_0 = arith.constant 0 : i32
    return %arg0, %c0_i32 : i32, i32
  }
}

</mosaic_0001>

<bundles_post_ra>
// kernel: tpu_custom_call.1
= control target key start
LH: loop header
LB: loop body
LE: loop exit
PB: predicated region body
PF: predicated region fallthrough
CT: control target
= control target key end

     0   :  { %s3532_s0 = inlined_call_operand.vmem [shape: f32[16,8,8], index: 0, kind: input, shape index: {}]   ;;  %s3533_s1 = inlined_call_operand.vmem [shape: f32[8,160], index: 1, kind: input, shape index: {}]   ;;  %s3534_s2 = inlined_call_operand.vmem [shape: f32[1,160], index: 2, kind: input, shape index: {}]   ;;  %s3535_s3 = inlined_call_operand.vmem [shape: f32[128,32], index: 3, kind: input, shape index: {}]   ;;  %s3536_s4 = inlined_call_operand.vmem [shape: f32[128,32], index: 4, kind: input, shape index: {}]   ;;  %s3537_s5 = inlined_call_operand.vmem [shape: f32[128,32], index: 5, kind: input, shape index: {}]   ;;  %s3538_s6 = inlined_call_operand.vmem [shape: f32[1,32], index: 6, kind: input, shape index: {}]   ;;  %s3539_s7 = inlined_call_operand.vmem [shape: f32[32,32], index: 7, kind: input, shape index: {}]   ;;  %s3540_s8 = inlined_call_operand.vmem [shape: f32[32,32], index: 8, kind: input, shape index: {}]   ;;  %s3541_s9 = inlined_call_operand.vmem [shape: f32[32,32], index: 9, kind: input, shape index: {}]   ;;  %s3542_s10 = inlined_call_operand.vmem [shape: f32[1,32], index: 10, kind: input, shape index: {}]   ;;  %s3543_s11 = inlined_call_operand.vmem [shape: f32[32,32], index: 11, kind: input, shape index: {}]   ;;  %s3544_s12 = inlined_call_operand.vmem [shape: f32[1,32], index: 12, kind: input, shape index: {}]   ;;  %s3545_s13 = inlined_call_operand.vmem [shape: f32[32,32], index: 13, kind: input, shape index: {}]   ;;  %s3546_s14 = inlined_call_operand.vmem [shape: f32[1,32], index: 14, kind: input, shape index: {}]   ;;  %s3547_s15 = inlined_call_operand.hbm [shape: f32[16,32], index: 15, kind: output, shape index: {}]  }
   0x1   :  { %3552 = sst [smem:[#allocation11_spill]] %s3533_s1 }
   0x2   :  { %20 = vsyncpa [#allocation5], 0 }
   0x3   :  { %22 = vsyncpa [#allocation5 + $0x1], 0  ;;  %s2928_s18 = smov 0   ;;  %s2930_s19 = smov 0  }
   0x4   :  { %s2932_s20 = smov 0   ;;  %s2934_s21 = smov 0  }
   0x5 LB: > { %3553 = sst [smem:[#allocation7_spill]] %s2838_s20  ;;  %s2949_s22 = sadd.s32 4294967295, %s2842_s21   ;;  %s2842_s21 = sphi %s2934_s21, %s3561_s21   ;;  %s2838_s20 = sphi %s2932_s20, %s3566_s20   ;;  %s2834_s19 = sphi %s2930_s19, %s3565_s19   ;;  %s2830_s18 = sphi %s2928_s18, %s3564_s18  }
   0x6   : > { %s2136_s23 = sadd.s32 4294967294, %s2842_s21   ;;  %s2953_s24 = sadd.s32 1, %s2842_s21  }
   0x7   : > { %3554 = sst [smem:[#allocation8_spill]] %s2953_s24  ;;  %s355_s25 = sadd.s32 1, %s2838_s20 }
   0x8   : > { %s352_s26 = ssub.s32 %s2842_s21, %s2953_s24  ;;  %p365_p0 = scmp.ne.s32.totalorder %s2838_s20, %s2834_s19 }
   0x9   : > { %p353_p1 = scmp.eq.s32.totalorder %s352_s26, 0  ;;  %p366_p2 = scmp.eq.s32.totalorder %s2949_s22, 1 }
   0xa   : > { %p371_p3 = scmp.ne.s32.totalorder %s2834_s19, %s2830_s18  ;;  %p372_p4 = scmp.eq.s32.totalorder %s2136_s23, 1 }
   0xb   : > { %s2964_s27 = scalar_select %p353_p1, %s2838_s20, %s355_s25  }
   0xc   : > { %p2966_p5 = por %p366_p2, %p365_p0  ;;  %p2970_p6 = por %p372_p4, %p371_p3 }
   0xd   : > { %3555 = sst [smem:[#allocation9_spill]] %s2964_s27  ;;  %p2139_p7 = scmp.ge.s32.totalorder %s2842_s21, 1 }
   0xe   : > { %s3557_s29 = scalar_select %p2970_p6, 1, 0 }
   0xf   : > { %p441_p8 = scmp.lt.s32.totalorder %s2842_s21, 3 }
  0x10   : > { %3558 = sst [smem:[#allocation10_spill]] %s3557_s29 }
  0x11   : > { %p442_p9 = pnand %p2139_p7, %p441_p8 }
  0x12   : > { %s3559_s1 = sld [smem:[#allocation11_spill]] (!%p442_p9)  ;;  %s2141_s25 = sshll.u32 (!%p442_p9), %s2949_s22, 3  ;;  %v711_v2 = vld [vmem:[%s3535_s3] sm:$0xff] (!%p442_p9)  ;;  %v2844_v3 = vmov (!%p442_p9), 0.0   ;;  %v712_v4 = vld [vmem:[%s3535_s3 + $0x8] sm:$0xff] (!%p442_p9)  ;;  %v713_v5 = vld [vmem:[%s3535_s3 + $0x10] sm:$0xff] (!%p442_p9)  ;;  %v507_v44 = vlaneseq (!%p442_p9) }
  0x13   : > { %445 = sbr.rel (%p442_p9) target bundleno = 1334 (0x536), region = 80  ;;  %606 = vmatprep.mubr.f32.mxu0 (!%p442_p9), %v2844_v3  ;;  %663 = vst [vmem:[#allocation2] sm:$0x1] (!%p442_p9), %v2844_v3  ;;  %664 = vst [vmem:[#allocation2 + $0x10] sm:$0x1] (!%p442_p9), %v2844_v3  ;;  %p490_p10 = scmp.lt.s32.totalorder (!%p442_p9), %s2141_s25, 15  ;;  %v2540_v7 = vpack.c.bf16 (!%p442_p9), %v712_v4, %v711_v2 }
  0x14   : > { %665 = vst [vmem:[#allocation2 + $0x20] sm:$0x1] (!%p442_p9), %v2844_v3  ;;  %666 = vst [vmem:[#allocation2 + $0x30] sm:$0x1] (!%p442_p9), %v2844_v3  ;;  %v714_v6 = vld [vmem:[%s3535_s3 + $0x18] sm:$0xff] (!%p442_p9)  ;;  %v715_v9 = vld [vmem:[%s3535_s3 + $0x20] sm:$0xff] (!%p442_p9) }
  0x15   : > { %667 = vst [vmem:[#allocation2 + $0x40] sm:$0x1] (!%p442_p9), %v2844_v3  ;;  %668 = vst [vmem:[#allocation2 + $0x50] sm:$0x1] (!%p442_p9), %v2844_v3  ;;  %v2544_v8 = vpack.c.bf16 (!%p442_p9), %v714_v6, %v713_v5  ;;  %v716_v10 = vld [vmem:[%s3535_s3 + $0x28] sm:$0xff] (!%p442_p9)  ;;  %2541 = vmatprep.subr.bf16.mxu1 (!%p442_p9), %v2540_v7  ;;  %vm517_vm0 = vcmask (!%p442_p9), 64512  }
  0x16   : > { %669 = vst [vmem:[#allocation2 + $0x60] sm:$0x1] (!%p442_p9), %v2844_v3  ;;  %670 = vst [vmem:[#allocation2 + $0x70] sm:$0x1] (!%p442_p9), %v2844_v3  ;;  %2543 = vmatpush3.bf16.msra.mxu1 (!%p442_p9), %v2540_v7  ;;  %v2548_v11 = vpack.c.bf16 (!%p442_p9), %v716_v10, %v715_v9  ;;  %v717_v13 = vld [vmem:[%s3535_s3 + $0x30] sm:$0xff] (!%p442_p9)  ;;  %v718_v14 = vld [vmem:[%s3535_s3 + $0x38] sm:$0xff] (!%p442_p9) }
  0x17   : > { %671 = vst [vmem:[#allocation2 + $0x9] sm:$0x1] (!%p442_p9), %v2844_v3  ;;  %672 = vst [vmem:[#allocation2 + $0x19] sm:$0x1] (!%p442_p9), %v2844_v3  ;;  %2545 = vmatprep.subr.bf16.mxu1 (!%p442_p9), %v2544_v8  ;;  %v2552_v16 = vpack.c.bf16 (!%p442_p9), %v718_v14, %v717_v13  ;;  %v719_v23 = vld [vmem:[%s3535_s3 + $0x40] sm:$0xff] (!%p442_p9)  ;;  %v720_v24 = vld [vmem:[%s3535_s3 + $0x48] sm:$0xff] (!%p442_p9) }
  0x18   : > { %v504_v0 = vld [vmem:[%s3559_s1 + $0x8] sm:$0xff] (!%p442_p9)  ;;  %v503_v1 = vld [vmem:[%s3559_s1] sm:$0xff] (!%p442_p9)  ;;  %673 = vst [vmem:[#allocation2 + $0x29] sm:$0x1] (!%p442_p9), %v2844_v3  ;;  %674 = vst [vmem:[#allocation2 + $0x39] sm:$0x1] (!%p442_p9), %v2844_v3  ;;  %v2556_v25 = vpack.c.bf16 (!%p442_p9), %v720_v24, %v719_v23 }
  0x19   : > { %542 = vmatprep.subr.mxu0 (!%p442_p9), %v504_v0  ;;  %675 = vst [vmem:[#allocation2 + $0x49] sm:$0x1] (!%p442_p9), %v2844_v3  ;;  %676 = vst [vmem:[#allocation2 + $0x59] sm:$0x1] (!%p442_p9), %v2844_v3  ;;  %v721_v26 = vld [vmem:[%s3535_s3 + $0x50] sm:$0xff] (!%p442_p9)  ;;  %v722_v27 = vld [vmem:[%s3535_s3 + $0x58] sm:$0xff] (!%p442_p9) }
  0x1a   : > { %677 = vst [vmem:[#allocation2 + $0x69] sm:$0x1] %v2844_v3  ;;  %678 = vst [vmem:[#allocation2 + $0x79] sm:$0x1] %v2844_v3  ;;  %543 = vmatpush1.msra.mxu0 %v503_v1  ;;  %s3568_s25 = smov (!%p490_p10, %s2141_s25), 15  ;;  %2547 = vmatpush3.bf16.msra.mxu1 %v2544_v8  ;;  %v2560_v28 = vpack.c.bf16 %v722_v27, %v721_v26  ;;  %v723_v29 = vld [vmem:[%s3535_s3 + $0x60] sm:$0xff] }
  0x1b   : > { %s2142_s27 = sshll.u32 %s3568_s25, 3  ;;  %2549 = vmatprep.subr.bf16.mxu1 %v2548_v11  ;;  %v724_v30 = vld [vmem:[%s3535_s3 + $0x68] sm:$0xff]  ;;  %v725_v32 = vld [vmem:[%s3535_s3 + $0x70] sm:$0xff]  ;;  %v726_v33 = vld [vmem:[%s3535_s3 + $0x78] sm:$0xff]  ;;  %v3094_v45 = vshrl.u32 %v507_v44, 7  ;;  %vm1097_vm1 = vcmask 253952  }
  0x1c   : > { %s3021_s17 = scalar_lea.vmem %s3532_s0, %s2142_s27  ;;  %v2564_v31 = vpack.c.bf16 %v724_v30, %v723_v29  ;;  %v2568_v34 = vpack.c.bf16 %v726_v33, %v725_v32  ;;  %v687_v35 = vld [vmem:[%s3536_s4] sm:$0xff]  ;;  %v688_v36 = vld [vmem:[%s3536_s4 + $0x8] sm:$0xff]  ;;  %v1137_v40 = vld [vmem:[%s3539_s7 + $0x10] sm:$0xff]  ;;  %1098 = vst.msk [vmem:[#allocation3] sm:$0x1] %vm1097_vm1, %v2844_v3  ;;  %vm1114_vm2 = vcmask 261120  }
  0x1d   : > { %v495_v12 = vld [vmem:[%s3021_s17] sm:$0xff]  ;;  %v496_v15 = vld [vmem:[%s3021_s17 + $0x8] sm:$0xff]  ;;  %v497_v17 = vld [vmem:[%s3021_s17 + $0x10] sm:$0xff]  ;;  %v2572_v37 = vpack.c.bf16 %v688_v36, %v687_v35  ;;  %v509_v46 = vsub.s32 0, %v3094_v45  ;;  %1099 = vst.msk [vmem:[#allocation3 + $0x10] sm:$0x1] %vm1097_vm1, %v2844_v3 }
  0x1e   : > { %2143 = vmatmul.mubr.msk.f32.vlgmr.msra.gmra.mrb[0].mxu0 %vm517_vm0, %v495_v12  ;;  %2551 = vmatpush3.bf16.msra.mxu1 %v2548_v11  ;;  %v498_v18 = vld [vmem:[%s3021_s17 + $0x18] sm:$0xff]  ;;  %v499_v19 = vld [vmem:[%s3021_s17 + $0x20] sm:$0xff]  ;;  %v500_v20 = vld [vmem:[%s3021_s17 + $0x28] sm:$0xff]  ;;  %1100 = vst.msk [vmem:[#allocation3 + $0x20] sm:$0x1] %vm1097_vm1, %v2844_v3  ;;  %vm2846_vm3 = vmmov 0  }
  0x1f   : > { %612 = vmatprep.mubr.f32.mxu0 %v2844_v3  ;;  %2553 = vmatprep.subr.bf16.mxu1 %v2552_v16  ;;  %v501_v21 = vld [vmem:[%s3021_s17 + $0x30] sm:$0xff]  ;;  %v502_v22 = vld [vmem:[%s3021_s17 + $0x38] sm:$0xff]  ;;  %v1135_v38 = vld [vmem:[%s3539_s7] sm:$0xff]  ;;  %1101 = vst.msk [vmem:[#allocation3 + $0x30] sm:$0x1] %vm1097_vm1, %v2844_v3  ;;  %vm1976_vm4 = vcmask 1041409  }
  0x20   : > { %v1136_v39 = vld [vmem:[%s3539_s7 + $0x8] sm:$0xff]  ;;  %v1138_v42 = vld [vmem:[%s3539_s7 + $0x18] sm:$0xff]  ;;  %v3100_v47 = vld [vmem:[%s3534_s2] sm:$0x3]  ;;  %1102 = vst.msk [vmem:[#allocation3 + $0x40] sm:$0x1] %vm1097_vm1, %v2844_v3 }
  0x21   : > { %v2636_v41 = vpack.c.bf16 %v1136_v39, %v1135_v38  ;;  %v2640_v43 = vpack.c.bf16 %v1138_v42, %v1137_v40  ;;  %v3103_v48 = vrot.slane %v3100_v47, %v509_v46  ;;  %v689_v63 = vld [vmem:[%s3536_s4 + $0x10] sm:$0xff]  ;;  %v690_v0 = vld [vmem:[%s3536_s4 + $0x18] sm:$0xff]  ;;  %v691_v8 = vld [vmem:[%s3536_s4 + $0x20] sm:$0xff]  ;;  %1103 = vst.msk [vmem:[#allocation3 + $0x50] sm:$0x1] %vm1097_vm1, %v2844_v3  ;;  %vm1978_vm5 = vcmask 1042434  }
  0x22   : > { %2144 = vmatmul.mubr.msk.f32.gmra.mrb[2].mxu0 %vm517_vm0, %v496_v15  ;;  %2555 = vmatpush3.bf16.msra.mxu1 %v2552_v16  ;;  %v2576_v5 = vpack.c.bf16 %v690_v0, %v689_v63  ;;  %v692_v9 = vld [vmem:[%s3536_s4 + $0x28] sm:$0xff]  ;;  %v693_v16 = vld [vmem:[%s3536_s4 + $0x30] sm:$0xff]  ;;  %v695_v24 = vld [vmem:[%s3536_s4 + $0x40] sm:$0xff]  ;;  %1104 = vst.msk [vmem:[#allocation3 + $0x60] sm:$0x1] %vm1097_vm1, %v2844_v3  ;;  %vm1980_vm6 = vcmask 1043459  }
  0x23   : > { %618 = vmatprep.mubr.f32.mxu0 %v2844_v3  ;;  %2557 = vmatprep.subr.bf16.mxu1 %v2556_v25  ;;  %v2580_v13 = vpack.c.bf16 %v692_v9, %v691_v8  ;;  %v697_v32 = vld [vmem:[%s3536_s4 + $0x50] sm:$0xff]  ;;  %v698_v33 = vld [vmem:[%s3536_s4 + $0x58] sm:$0xff]  ;;  %v699_v39 = vld [vmem:[%s3536_s4 + $0x60] sm:$0xff]  ;;  %1105 = vst.msk [vmem:[#allocation3 + $0x70] sm:$0x1] %vm1097_vm1, %v2844_v3  ;;  %vm1982_vm7 = vcmask 1044484  }
  0x24   : > { %2637 = vmatprep.subr.bf16.mxu0 %v2636_v41  ;;  %v700_v40 = vld [vmem:[%s3536_s4 + $0x68] sm:$0xff]  ;;  %v702_v44 = vld [vmem:[%s3536_s4 + $0x78] sm:$0xff]  ;;  %v949_v0 = vld [vmem:[%s3537_s5 + $0x20] sm:$0xff]  ;;  %1106 = vst.msk [vmem:[#allocation3 + $0x9] sm:$0x1] %vm1097_vm1, %v2844_v3  ;;  %vm1984_vm8 = vcmask 1045509  }
  0x25   : > { %2639 = vmatpush3.bf16.msra.mxu0 %v2636_v41  ;;  %v2596_v41 = vpack.c.bf16 %v700_v40, %v699_v39  ;;  %v957_v9 = vld [vmem:[%s3537_s5 + $0x60] sm:$0xff]  ;;  %1107 = vst.msk [vmem:[#allocation3 + $0x19] sm:$0x1] %vm1097_vm1, %v2844_v3  ;;  %1108 = vst.msk [vmem:[#allocation3 + $0x29] sm:$0x1] %vm1097_vm1, %v2844_v3  ;;  %vm1986_vm9 = vcmask 1046534  }
  0x26   : > { %2145 = vmatmul.mubr.msk.f32.gmra.mrb[4].mxu0 %vm517_vm0, %v497_v17  ;;  %2559 = vmatpush3.bf16.msra.mxu1 %v2556_v25  ;;  %v694_v17 = vld [vmem:[%s3536_s4 + $0x38] sm:$0xff]  ;;  %v696_v25 = vld [vmem:[%s3536_s4 + $0x48] sm:$0xff]  ;;  %1109 = vst.msk [vmem:[#allocation3 + $0x39] sm:$0x1] %vm1097_vm1, %v2844_v3  ;;  %1110 = vst.msk [vmem:[#allocation3 + $0x49] sm:$0x1] %vm1097_vm1, %v2844_v3 }
  0x27   : > { %624 = vmatprep.mubr.f32.mxu0 %v2844_v3  ;;  %2561 = vmatprep.subr.bf16.mxu1 %v2560_v28  ;;  %v2588_v29 = vpack.c.bf16 %v696_v25, %v695_v24  ;;  %1111 = vst.msk [vmem:[#allocation3 + $0x59] sm:$0x1] %vm1097_vm1, %v2844_v3  ;;  %1112 = vst.msk [vmem:[#allocation3 + $0x69] sm:$0x1] %vm1097_vm1, %v2844_v3  ;;  %v1123_v24 = vld [vmem:[%s3540_s8] sm:$0xff]  ;;  %v1124_v25 = vld [vmem:[%s3540_s8 + $0x8] sm:$0xff] }
  0x28   : > { %2641 = vmatprep.subr.bf16.mxu0 %v2640_v43  ;;  %1113 = vst.msk [vmem:[#allocation3 + $0x79] sm:$0x1] %vm1097_vm1, %v2844_v3  ;;  %vm1988_vm10 = vcmask 1047559   ;;  %s486_s20 = sand.u32 1, %s2834_s19   ;;  %s2189_s25 = sshll.u32 %s2949_s22, 7 }
  0x29   : > { %2643 = vmatpush3.bf16.msra.mxu0 %v2640_v43  ;;  %v701_v43 = vld [vmem:[%s3536_s4 + $0x70] sm:$0xff]  ;;  %s2140_s17 = sshll.u32 %s486_s20, 3  ;;  %s3489_s16 = scalar_lea.hbm %s3547_s15, %s2189_s25 }
  0x2a   : > { %2146 = vmatmul.mubr.msk.f32.gmra.mrb[6].mxu0 %vm517_vm0, %v498_v18  ;;  %2563 = vmatpush3.bf16.msra.mxu1 %v2560_v28  ;;  %v2600_v46 = vpack.c.bf16 %v702_v44, %v701_v43  ;;  %s488_s23 = scalar_lea.vmem [#allocation4], %s2140_s17  ;;  %s2064_s1 = scalar_lea.sflag [#allocation5], %s486_s20 }
  0x2b   : > { %630 = vmatprep.mubr.f32.mxu0 %v2844_v3  ;;  %2565 = vmatprep.subr.bf16.mxu1 %v2564_v31  ;;  %s2077_s26 = sshll.u32 %s488_s23, 4  ;;  %s2847_s22 = smov [#allocation4]   ;;  %s3491_s26 = int_to_ptr.vmem [resolvable:$true] %s2077_s26 }
  0x2c   : > { %s2780_s24 = scalar_lea.vmem %s3491_s26, 128  ;;  %s2784_s17 = sshll.u32 %s2847_s22, 4  ;;  %s2785_s17 = int_to_ptr.vmem [resolvable:$false] %s2784_s17 }
  0x2d   : > { %p2781_p11 = scmp.ne.s32.totalorder %s3491_s26, %s2780_s24  ;;  %s2786_s29 = scalar_lea.vmem %s2785_s17, 256 }
  0x2e   : > { %2147 = vmatmul.mubr.msk.f32.gmra.mrb[8].mxu0 %vm517_vm0, %v499_v19  ;;  %2567 = vmatpush3.bf16.msra.mxu1 %v2564_v31  ;;  %p2787_p0 = scmp.lt.s32.totalorder %s3491_s26, %s2785_s17  ;;  %p2788_p1 = scmp.lt.s32.totalorder %s2786_s29, %s2780_s24 }
  0x2f   : > { %636 = vmatprep.mubr.f32.mxu0 %v2844_v3  ;;  %2569 = vmatprep.subr.bf16.mxu1 %v2568_v34  ;;  %p2782_p12 = pnand %p2781_p11, %p2966_p5 }
  0x30   : > { %p2789_p2 = por %p2788_p1, %p2787_p0 }
  0x31   : > { %p2783_p13 = pneg %p2782_p12 }
  0x32   : > { %2148 = vmatmul.mubr.msk.f32.gmra.mrb[10].mxu0 %vm517_vm0, %v500_v20  ;;  %2571 = vmatpush3.bf16.msra.mxu1 %v2568_v34 }
  0x33   : > { %642 = vmatprep.mubr.f32.mxu0 %v2844_v3  ;;  %2573 = vmatprep.subr.bf16.mxu1 %v2572_v37  ;;  %p2790_p3 = pnand %p2789_p2, %p2783_p13 }
  0x36   : > { %2149 = vmatmul.mubr.msk.f32.gmra.mrb[12].mxu0 %vm517_vm0, %v501_v21  ;;  %v2584_v21 = vpack.c.bf16 %v694_v17, %v693_v16 }
  0x37   : > { %648 = vmatprep.mubr.f32.mxu0 %v2844_v3 }
  0x3a   : > { %2150 = vmatmul.mubr.msk.f32.gmra.mrb[14].mxu0 %vm517_vm0, %v502_v22 }
  0xf1   : > { %v608_v49 = vpop.f32.mrb[0].mxu0 }
  0xf2   : > { %v3106_v50 = vadd.f32 %v608_v49, %v3103_v48  ;;  %v3108_v51 = vpop.f32.mrb[1].mxu0  ;;  %v945_v49 = vld [vmem:[%s3537_s5] sm:$0xff] }
  0xf4   : > { %v655_v52 = vmax.f32 %v3106_v50, 0.0  ;;  %v950_v50 = vld [vmem:[%s3537_s5 + $0x28] sm:$0xff] }
  0xf5   : > { %v614_v53 = vpop.f32.mrb[2].mxu0 }
  0xf6   : > { %679 = vst [vmem:[#allocation2 + $0x1] sm:$0xff] %v655_v52  ;;  %v3114_v54 = vadd.f32 %v614_v53, %v3103_v48  ;;  %v3116_v55 = vpop.f32.mrb[3].mxu0  ;;  %v946_v53 = vld [vmem:[%s3537_s5 + $0x8] sm:$0xff] }
  0xf8   : > { %v656_v56 = vmax.f32 %v3114_v54, 0.0 }
  0xf9   : > { %v620_v57 = vpop.f32.mrb[4].mxu0 }
  0xfa   : > { %680 = vst [vmem:[#allocation2 + $0x11] sm:$0xff] %v656_v56  ;;  %v3122_v58 = vadd.f32 %v620_v57, %v3103_v48  ;;  %v3124_v59 = vpop.f32.mrb[5].mxu0  ;;  %v2604_v57 = vpack.c.bf16 %v946_v53, %v945_v49  ;;  %v1126_v49 = vld [vmem:[%s3540_s8 + $0x18] sm:$0xff] }
  0xfc   : > { %v657_v60 = vmax.f32 %v3122_v58, 0.0  ;;  %v954_v58 = vld [vmem:[%s3537_s5 + $0x48] sm:$0xff] }
  0xfd   : > { %v703_v61 = vld [vmem:[#allocation2] sm:$0xff]  ;;  %v626_v62 = vpop.f32.mrb[6].mxu0 }
  0xfe   : > { %681 = vst [vmem:[#allocation2 + $0x21] sm:$0xff] %v657_v60  ;;  %2349 = vmatprep.mubr.f32.mxu1 %v703_v61  ;;  %v3136_v1 = vadd.f32 %v626_v62, %v3103_v48  ;;  %v3138_v2 = vpop.f32.mrb[7].mxu0  ;;  %v947_v61 = vld [vmem:[%s3537_s5 + $0x10] sm:$0xff]  ;;  %v948_v62 = vld [vmem:[%s3537_s5 + $0x18] sm:$0xff] }
  0xff   : > { %v2608_v63 = vpack.c.bf16 %v948_v62, %v947_v61 }
 0x100   : > { %v658_v4 = vmax.f32 %v3136_v1, 0.0  ;;  %v955_v1 = vld [vmem:[%s3537_s5 + $0x50] sm:$0xff] }
 0x101   : > { %v704_v6 = vld [vmem:[#allocation2 + $0x10] sm:$0xff]  ;;  %v632_v7 = vpop.f32.mrb[8].mxu0 }
 0x102   : > { %682 = vst [vmem:[#allocation2 + $0x31] sm:$0xff] %v658_v4  ;;  %2350 = vmatmul.mubr.f32.vlgmr.msra.gmra.mrb[0].mxu1 %v704_v6  ;;  %v3150_v10 = vadd.f32 %v632_v7, %v3103_v48  ;;  %v3152_v11 = vpop.f32.mrb[9].mxu0  ;;  %v952_v6 = vld [vmem:[%s3537_s5 + $0x38] sm:$0xff]  ;;  %v937_v7 = vld [vmem:[#allocation2 + $0x2] sm:$0xff] }
 0x103   : > { %2575 = vmatpush3.bf16.msra.mxu1 %v2572_v37  ;;  %v2592_v37 = vpack.c.bf16 %v698_v33, %v697_v32  ;;  %v938_v16 = vld [vmem:[#allocation2 + $0x12] sm:$0xff] }
 0x104   : > { %v659_v12 = vmax.f32 %v3150_v10, 0.0  ;;  %2577 = vmatprep.subr.bf16.mxu1 %v2576_v5  ;;  %v958_v10 = vld [vmem:[%s3537_s5 + $0x68] sm:$0xff] }
 0x105   : > { %v638_v14 = vpop.f32.mrb[10].mxu0  ;;  %v705_v15 = vld [vmem:[#allocation2 + $0x20] sm:$0xff] }
 0x106   : > { %683 = vst [vmem:[#allocation2 + $0x41] sm:$0xff] %v659_v12  ;;  %v3164_v18 = vadd.f32 %v638_v14, %v3103_v48  ;;  %v3166_v19 = vpop.f32.mrb[11].mxu0  ;;  %2352 = vmatprep.mubr.f32.mxu1 %v705_v15  ;;  %v960_v14 = vld [vmem:[%s3537_s5 + $0x78] sm:$0xff]  ;;  %v939_v17 = vld [vmem:[#allocation2 + $0x22] sm:$0xff] }
 0x107   : > { %2579 = vmatpush3.bf16.msra.mxu1 %v2576_v5  ;;  %v951_v5 = vld [vmem:[%s3537_s5 + $0x30] sm:$0xff] }
 0x108   : > { %v660_v20 = vmax.f32 %v3164_v18, 0.0  ;;  %2581 = vmatprep.subr.bf16.mxu1 %v2580_v13  ;;  %v2616_v54 = vpack.c.bf16 %v952_v6, %v951_v5  ;;  %v1405_v6 = vld [vmem:[%s3541_s9] sm:$0xff] }
 0x109   : > { %v644_v22 = vpop.f32.mrb[12].mxu0  ;;  %v706_v23 = vld [vmem:[#allocation2 + $0x30] sm:$0xff] }
 0x10a   : > { %684 = vst [vmem:[#allocation2 + $0x51] sm:$0xff] %v660_v20  ;;  %v3178_v26 = vadd.f32 %v644_v22, %v3103_v48  ;;  %v3180_v27 = vpop.f32.mrb[13].mxu0  ;;  %2353 = vmatmul.mubr.f32.gmra.mrb[2].mxu1 %v706_v23  ;;  %v940_v18 = vld [vmem:[#allocation2 + $0x32] sm:$0xff] }
 0x10b   : > { %2583 = vmatpush3.bf16.msra.mxu1 %v2580_v13  ;;  %v959_v13 = vld [vmem:[%s3537_s5 + $0x70] sm:$0xff] }
 0x10c   : > { %v661_v28 = vmax.f32 %v3178_v26, 0.0  ;;  %2585 = vmatprep.subr.bf16.mxu1 %v2584_v21  ;;  %v2632_v15 = vpack.c.bf16 %v960_v14, %v959_v13  ;;  %v2644_v26 = vpack.c.bf16 %v1124_v25, %v1123_v24  ;;  %v1408_v13 = vld [vmem:[%s3541_s9 + $0x18] sm:$0xff] }
 0x10d   : > { %v650_v30 = vpop.f32.mrb[14].mxu0  ;;  %v707_v31 = vld [vmem:[#allocation2 + $0x40] sm:$0xff] }
 0x10e   : > { %685 = vst [vmem:[#allocation2 + $0x61] sm:$0xff] %v661_v28  ;;  %v651_v34 = vadd.f32 %v650_v30, %v3103_v48  ;;  %v3190_v35 = vpop.f32.mrb[15].mxu0  ;;  %2355 = vmatprep.mubr.f32.mxu1 %v707_v31  ;;  %2645 = vmatprep.subr.bf16.mxu0 %v2644_v26 }
 0x10f   : > { %2587 = vmatpush3.bf16.msra.mxu1 %v2584_v21 }
 0x110   : > { %v662_v36 = vmax.f32 %v651_v34, 0.0  ;;  %2589 = vmatprep.subr.bf16.mxu1 %v2588_v29 }
 0x111   : > { %v708_v38 = vld [vmem:[#allocation2 + $0x50] sm:$0xff] }
 0x112   : > { %686 = vst [vmem:[#allocation2 + $0x71] sm:$0xff] %v662_v36  ;;  %2356 = vmatmul.mubr.f32.gmra.mrb[4].mxu1 %v708_v38  ;;  %v942_v21 = vld [vmem:[#allocation2 + $0x52] sm:$0xff] }
 0x113   : > { %2591 = vmatpush3.bf16.msra.mxu1 %v2588_v29 }
 0x114   : > { %2593 = vmatprep.subr.bf16.mxu1 %v2592_v37 }
 0x115   : > { %v709_v42 = vld [vmem:[#allocation2 + $0x60] sm:$0xff] }
 0x116   : > { %2358 = vmatprep.mubr.f32.mxu1 %v709_v42  ;;  %v943_v22 = vld [vmem:[#allocation2 + $0x62] sm:$0xff] }
 0x117   : > { %2595 = vmatpush3.bf16.msra.mxu1 %v2592_v37 }
 0x118   : > { %2597 = vmatprep.subr.bf16.mxu1 %v2596_v41 }
 0x119   : > { %v710_v48 = vld [vmem:[#allocation2 + $0x70] sm:$0xff] }
 0x11a   : > { %2359 = vmatmul.mubr.f32.gmra.mrb[6].mxu1 %v710_v48  ;;  %v944_v23 = vld [vmem:[#allocation2 + $0x72] sm:$0xff] }
 0x11b   : > { %2599 = vmatpush3.bf16.msra.mxu1 %v2596_v41  ;;  %2393 = vmatprep.mubr.f32.mxu1 %v655_v52  ;;  %v2612_v52 = vpack.c.bf16 %v950_v50, %v949_v0  ;;  %v1125_v48 = vld [vmem:[%s3540_s8 + $0x10] sm:$0xff] }
 0x11c   : > { %2601 = vmatprep.subr.bf16.mxu1 %v2600_v46  ;;  %v2648_v50 = vpack.c.bf16 %v1126_v49, %v1125_v48 }
 0x11f   : > { %2603 = vmatpush3.bf16.msra.mxu1 %v2600_v46 }
 0x120   : > { %2605 = vmatprep.subr.bf16.mxu1 %v2604_v57 }
 0x122   : > { %2394 = vmatmul.mubr.f32.vlgmr.msra.gmra.mrb[0].mxu1 %v656_v56  ;;  %v953_v56 = vld [vmem:[%s3537_s5 + $0x40] sm:$0xff] }
 0x123   : > { %2396 = vmatprep.mubr.f32.mxu1 %v657_v60  ;;  %2607 = vmatpush3.bf16.msra.mxu1 %v2604_v57  ;;  %v2620_v60 = vpack.c.bf16 %v954_v58, %v953_v56 }
 0x124   : > { %2609 = vmatprep.subr.bf16.mxu1 %v2608_v63 }
 0x126   : > { %2397 = vmatmul.mubr.f32.gmra.mrb[2].mxu1 %v658_v4  ;;  %v956_v4 = vld [vmem:[%s3537_s5 + $0x58] sm:$0xff] }
 0x127   : > { %2399 = vmatprep.mubr.f32.mxu1 %v659_v12  ;;  %2611 = vmatpush3.bf16.msra.mxu1 %v2608_v63  ;;  %v2624_v8 = vpack.c.bf16 %v956_v4, %v955_v1  ;;  %v2628_v12 = vpack.c.bf16 %v958_v10, %v957_v9 }
 0x128   : > { %2613 = vmatprep.subr.bf16.mxu1 %v2612_v52 }
 0x12a   : > { %2400 = vmatmul.mubr.f32.gmra.mrb[4].mxu1 %v660_v20  ;;  %v941_v20 = vld [vmem:[#allocation2 + $0x42] sm:$0xff] }
 0x12b   : > { %2402 = vmatprep.mubr.f32.mxu1 %v661_v28  ;;  %2615 = vmatpush3.bf16.msra.mxu1 %v2612_v52  ;;  %v2151_v28 = vld [vmem:[%s3538_s6] ss:$0 sm:$0xff] }
 0x12c   : > { %2617 = vmatprep.subr.bf16.mxu1 %v2616_v54 }
 0x12e   : > { %2403 = vmatmul.mubr.f32.gmra.mrb[6].mxu1 %v662_v36 }
 0x12f   : > { %2619 = vmatpush3.bf16.msra.mxu1 %v2616_v54  ;;  %2437 = vmatprep.mubr.f32.mxu1 %v937_v7  ;;  %v1406_v54 = vld [vmem:[%s3541_s9 + $0x8] sm:$0xff] }
 0x130   : > { %2621 = vmatprep.subr.bf16.mxu1 %v2620_v60  ;;  %v2652_v1 = vpack.c.bf16 %v1406_v54, %v1405_v6 }
 0x133   : > { %2623 = vmatpush3.bf16.msra.mxu1 %v2620_v60 }
 0x134   : > { %2625 = vmatprep.subr.bf16.mxu1 %v2624_v8 }
 0x137   : > { %2627 = vmatpush3.bf16.msra.mxu1 %v2624_v8 }
 0x138   : > { %2629 = vmatprep.subr.bf16.mxu1 %v2628_v12 }
 0x13b   : > { %2631 = vmatpush3.bf16.msra.mxu1 %v2628_v12  ;;  %v1407_v12 = vld [vmem:[%s3541_s9 + $0x10] sm:$0xff] }
 0x13c   : > { %2633 = vmatprep.subr.bf16.mxu1 %v2632_v15  ;;  %v2656_v14 = vpack.c.bf16 %v1408_v13, %v1407_v12  ;;  %v2845_v12 = vmov 0.0|0.0  }
 0x13f   : > { %2635 = vmatpush3.bf16.msra.mxu1 %v2632_v15  ;;  %v1577_v15 = vld [vmem:[%s3543_s11] sm:$0xff] }
 0x142   : > { %2438 = vmatmul.mubr.f32.vlgmr.msra.gmra.mrb[0].mxu1 %v938_v16  ;;  %v1578_v16 = vld [vmem:[%s3543_s11 + $0x8] sm:$0xff] }
 0x143   : > { %2440 = vmatprep.mubr.f32.mxu1 %v939_v17  ;;  %v2660_v17 = vpack.c.bf16 %v1578_v16, %v1577_v15  ;;  %v2177_v16 = vld [vmem:[%s3544_s12] ss:$0 sm:$0xff] }
 0x146   : > { %2441 = vmatmul.mubr.f32.gmra.mrb[2].mxu1 %v940_v18 }
 0x147   : > { %2443 = vmatprep.mubr.f32.mxu1 %v941_v20 }
 0x14a   : > { %2444 = vmatmul.mubr.f32.gmra.mrb[4].mxu1 %v942_v21 }
 0x14b   : > { %2446 = vmatprep.mubr.f32.mxu1 %v943_v22 }
 0x14e   : > { %2447 = vmatmul.mubr.f32.gmra.mrb[6].mxu1 %v944_v23 }
 0x215   : > { %v2439_v29 = vpop.f32.mrb[0].mxu1 }
 0x216   : > { %v3305_v30 = vadd.f32 %v2439_v29, %v2151_v28  ;;  %v1027_v31 = vpop.f32.mrb[1].mxu1  ;;  %v1580_v29 = vld [vmem:[%s3543_s11 + $0x18] sm:$0xff] }
 0x217   : > { %v1081_v32 = vadd.f32 %v2151_v28, %v1027_v31  ;;  %v513_v31 = vsub.s32 1, %v3094_v45 }
 0x218   : > { %v1090_v33 = vmax.f32 %v3305_v30, 0.0 }
 0x219   : > { %v1089_v34 = vmax.f32 %v1081_v32, 0.0  ;;  %v2442_v36 = vpop.f32.mrb[2].mxu1  ;;  %v2176_v32 = vld [vmem:[%s3542_s10] ss:$0 sm:$0xff] }
 0x21a   : > { %1116 = vst.msk [vmem:[#allocation3 + $0x11] sm:$0xff] %vm1114_vm2, %v1090_v33  ;;  %v1084_v37 = vadd.f32 %v2442_v36, %v2151_v28  ;;  %v1037_v38 = vpop.f32.mrb[3].mxu1 }
 0x21b   : > { %1115 = vst.msk [vmem:[#allocation3 + $0x1] sm:$0xff] %vm1114_vm2, %v1089_v34  ;;  %v1083_v39 = vadd.f32 %v2151_v28, %v1037_v38 }
 0x21c   : > { %v1092_v40 = vmax.f32 %v1084_v37, 0.0 }
 0x21d   : > { %v1091_v41 = vmax.f32 %v1083_v39, 0.0  ;;  %v2445_v42 = vpop.f32.mrb[4].mxu1 }
 0x21e   : > { %1118 = vst.msk [vmem:[#allocation3 + $0x31] sm:$0xff] %vm1114_vm2, %v1092_v40  ;;  %v1086_v43 = vadd.f32 %v2445_v42, %v2151_v28  ;;  %v1047_v44 = vpop.f32.mrb[5].mxu1 }
 0x21f   : > { %1117 = vst.msk [vmem:[#allocation3 + $0x21] sm:$0xff] %vm1114_vm2, %v1091_v41  ;;  %v1085_v46 = vadd.f32 %v2151_v28, %v1047_v44 }
 0x220   : > { %v1094_v53 = vmax.f32 %v1086_v43, 0.0 }
 0x221   : > { %v1093_v57 = vmax.f32 %v1085_v46, 0.0  ;;  %v2448_v61 = vpop.f32.mrb[6].mxu1  ;;  %v1128_v5 = vld [vmem:[#allocation3 + $0x10] sm:$0xff] }
 0x222   : > { %1120 = vst.msk [vmem:[#allocation3 + $0x51] sm:$0xff] %vm1114_vm2, %v1094_v53  ;;  %v1088_v62 = vadd.f32 %v2448_v61, %v2151_v28  ;;  %v1057_v63 = vpop.f32.mrb[7].mxu1  ;;  %v1127_v0 = vld [vmem:[#allocation3] sm:$0xff]  ;;  %v1398_v20 = vld [vmem:[#allocation3 + $0x12] sm:$0xff] }
 0x223   : > { %1119 = vst.msk [vmem:[#allocation3 + $0x41] sm:$0xff] %vm1114_vm2, %v1093_v57  ;;  %v1087_v52 = vadd.f32 %v2151_v28, %v1057_v63  ;;  %2457 = vmatprep.mubr.msk.f32.mxu0 %vm1114_vm2, %v1127_v0  ;;  %v1397_v18 = vld [vmem:[#allocation3 + $0x2] sm:$0xff]  ;;  %v1579_v28 = vld [vmem:[%s3543_s11 + $0x10] sm:$0xff] }
 0x224   : > { %v1096_v56 = vmax.f32 %v1088_v62, 0.0  ;;  %2458 = vmatmul.mubr.msk.f32.vlgmr.msra.gmra.mrb[16].mxu0 %vm1114_vm2, %v1128_v5  ;;  %v2664_v30 = vpack.c.bf16 %v1580_v29, %v1579_v28 }
 0x225   : > { %v1095_v58 = vmax.f32 %v1087_v52, 0.0  ;;  %2647 = vmatpush3.bf16.msra.mxu0 %v2644_v26  ;;  %v1130_v4 = vld [vmem:[#allocation3 + $0x30] sm:$0xff] }
 0x226   : > { %1122 = vst.msk [vmem:[#allocation3 + $0x71] sm:$0xff] %vm1114_vm2, %v1096_v56  ;;  %v1129_v60 = vld [vmem:[#allocation3 + $0x20] sm:$0xff]  ;;  %2649 = vmatprep.subr.bf16.mxu0 %v2648_v50  ;;  %v1400_v22 = vld [vmem:[#allocation3 + $0x32] sm:$0xff] }
 0x227   : > { %1121 = vst.msk [vmem:[#allocation3 + $0x61] sm:$0xff] %vm1114_vm2, %v1095_v58  ;;  %2460 = vmatprep.mubr.msk.f32.mxu0 %vm1114_vm2, %v1129_v60  ;;  %v1399_v21 = vld [vmem:[#allocation3 + $0x22] sm:$0xff] }
 0x228   : > { %2461 = vmatmul.mubr.msk.f32.gmra.mrb[18].mxu0 %vm1114_vm2, %v1130_v4 }
 0x229   : > { %2651 = vmatpush3.bf16.msra.mxu0 %v2648_v50  ;;  %v1132_v8 = vld [vmem:[#allocation3 + $0x50] sm:$0xff] }
 0x22a   : > { %v1131_v7 = vld [vmem:[#allocation3 + $0x40] sm:$0xff]  ;;  %2653 = vmatprep.subr.bf16.mxu0 %v2652_v1  ;;  %v1402_v24 = vld [vmem:[#allocation3 + $0x52] sm:$0xff] }
 0x22b   : > { %2463 = vmatprep.mubr.msk.f32.mxu0 %vm1114_vm2, %v1131_v7  ;;  %v1401_v23 = vld [vmem:[#allocation3 + $0x42] sm:$0xff] }
 0x22c   : > { %2464 = vmatmul.mubr.msk.f32.gmra.mrb[20].mxu0 %vm1114_vm2, %v1132_v8 }
 0x22d   : > { %v1134_v10 = vld [vmem:[#allocation3 + $0x70] sm:$0xff] }
 0x22e   : > { %v1133_v9 = vld [vmem:[#allocation3 + $0x60] sm:$0xff]  ;;  %v1404_v26 = vld [vmem:[#allocation3 + $0x72] sm:$0xff] }
 0x22f   : > { %2466 = vmatprep.mubr.msk.f32.mxu0 %vm1114_vm2, %v1133_v9  ;;  %v1403_v25 = vld [vmem:[#allocation3 + $0x62] sm:$0xff] }
 0x230   : > { %2467 = vmatmul.mubr.msk.f32.gmra.mrb[22].mxu0 %vm1114_vm2, %v1134_v10  ;;  %v1959_v10 = vld [vmem:[%s3545_s13 + $0x10] sm:$0xff] }
 0x231   : > { %2477 = vmatprep.mubr.msk.f32.mxu0 %vm1114_vm2, %v1089_v34 }
 0x234   : > { %2478 = vmatmul.mubr.msk.f32.vlgmr.msra.gmra.mrb[16].mxu0 %vm1114_vm2, %v1090_v33  ;;  %v514_v33 = vrot.slane %v3100_v47, %v513_v31 }
 0x235   : > { %2655 = vmatpush3.bf16.msra.mxu0 %v2652_v1  ;;  %2480 = vmatprep.mubr.msk.f32.mxu0 %vm1114_vm2, %v1091_v41 }
 0x236   : > { %2657 = vmatprep.subr.bf16.mxu0 %v2656_v14  ;;  %v617_v39 = vadd.f32 %v3116_v55, %v514_v33  ;;  %v611_v41 = vadd.f32 %v3108_v51, %v514_v33  ;;  %v629_v47 = vadd.f32 %v3138_v2, %v514_v33  ;;  %v641_v2 = vadd.f32 %v3166_v19, %v514_v33 }
 0x237   : > { %v653_v19 = vadd.f32 %v3190_v35, %v514_v33  ;;  %v1958_v35 = vld [vmem:[%s3545_s13 + $0x8] sm:$0xff] }
 0x238   : > { %2481 = vmatmul.mubr.msk.f32.gmra.mrb[18].mxu0 %vm1114_vm2, %v1092_v40 }
 0x239   : > { %2483 = vmatprep.mubr.msk.f32.mxu0 %vm1114_vm2, %v1093_v57  ;;  %2659 = vmatpush3.bf16.msra.mxu0 %v2656_v14  ;;  %v623_v57 = vadd.f32 %v3124_v59, %v514_v33  ;;  %v635_v59 = vadd.f32 %v3152_v11, %v514_v33  ;;  %v647_v11 = vadd.f32 %v3180_v27, %v514_v33  ;;  %v1957_v27 = vld [vmem:[%s3545_s13] sm:$0xff]  ;;  %v1960_v14 = vld [vmem:[%s3545_s13 + $0x18] sm:$0xff] }
 0x23a   : > { %2661 = vmatprep.subr.bf16.mxu0 %v2660_v17  ;;  %v2669_v13 = vpack.c.bf16 %v1958_v35, %v1957_v27  ;;  %v2672_v15 = vpack.c.bf16 %v1960_v14, %v1959_v10 }
 0x23c   : > { %2484 = vmatmul.mubr.msk.f32.gmra.mrb[20].mxu0 %vm1114_vm2, %v1094_v53 }
 0x23d   : > { %2486 = vmatprep.mubr.msk.f32.mxu0 %vm1114_vm2, %v1095_v58 }
 0x240   : > { %2487 = vmatmul.mubr.msk.f32.gmra.mrb[22].mxu0 %vm1114_vm2, %v1096_v56 }
 0x241   : > { %2497 = vmatprep.mubr.msk.f32.mxu0 %vm1114_vm2, %v1397_v18 }
 0x244   : > { %2498 = vmatmul.mubr.msk.f32.vlgmr.msra.gmra.mrb[16].mxu0 %vm1114_vm2, %v1398_v20 }
 0x245   : > { %2500 = vmatprep.mubr.msk.f32.mxu0 %vm1114_vm2, %v1399_v21  ;;  %2663 = vmatpush3.bf16.msra.mxu0 %v2660_v17 }
 0x246   : > { %2665 = vmatprep.subr.bf16.mxu0 %v2664_v30 }
 0x248   : > { %2501 = vmatmul.mubr.msk.f32.gmra.mrb[18].mxu0 %vm1114_vm2, %v1400_v22 }
 0x249   : > { %2503 = vmatprep.mubr.msk.f32.mxu0 %vm1114_vm2, %v1401_v23  ;;  %2667 = vmatpush3.bf16.msra.mxu0 %v2664_v30 }
 0x24a   : > { %2668 = vmatprep.subr.bf16.mxu0 %v2845_v12 }
 0x24c   : > { %2504 = vmatmul.mubr.msk.f32.gmra.mrb[20].mxu0 %vm1114_vm2, %v1402_v24 }
 0x24d   : > { %2506 = vmatprep.mubr.msk.f32.mxu0 %vm1114_vm2, %v1403_v25 }
 0x250   : > { %2507 = vmatmul.mubr.msk.f32.gmra.mrb[22].mxu0 %vm1114_vm2, %v1404_v26 }
 0x317   : > { %v2499_v34 = vpop.f32.mrb[16].mxu0 }
 0x318   : > { %v1554_v36 = vadd.f32 %v2499_v34, %v2176_v32  ;;  %v1499_v37 = vpop.f32.mrb[17].mxu0 }
 0x319   : > { %v1553_v38 = vadd.f32 %v2176_v32, %v1499_v37 }
 0x31a   : > { %v1562_v40 = vmax.f32 %v1554_v36, 0.0 }
 0x31b   : > { %v1561_v42 = vmax.f32 %v1553_v38, 0.0  ;;  %v2502_v43 = vpop.f32.mrb[18].mxu0 }
 0x31c   : > { %v3377_v44 = vadd.f32 %v1562_v40, %v617_v39  ;;  %v1556_v45 = vadd.f32 %v2502_v43, %v2176_v32  ;;  %v1509_v46 = vpop.f32.mrb[19].mxu0 }
 0x31d   : > { %v3379_v48 = vadd.f32 %v1561_v42, %v611_v41  ;;  %v1555_v49 = vadd.f32 %v2176_v32, %v1509_v46 }
 0x31e   : > { %v1564_v53 = vmax.f32 %v1556_v45, 0.0 }
 0x31f   : > { %v1563_v61 = vmax.f32 %v1555_v49, 0.0  ;;  %v2505_v62 = vpop.f32.mrb[20].mxu0  ;;  %2517 = vmatprep.mubr.msk.f32.mxu0 %vm1114_vm2, %v3379_v48 }
 0x320   : > { %v3385_v51 = vadd.f32 %v1564_v53, %v629_v47  ;;  %v1558_v55 = vadd.f32 %v2505_v62, %v2176_v32  ;;  %v1519_v63 = vpop.f32.mrb[21].mxu0  ;;  %2518 = vmatmul.mubr.msk.f32.vlgmr.msra.gmra.mrb[24].mxu0 %vm1114_vm2, %v3377_v44 }
 0x321   : > { %v3389_v0 = vadd.f32 %v1563_v61, %v623_v57  ;;  %v1557_v50 = vadd.f32 %v2176_v32, %v1519_v63  ;;  %2670 = vmatpush3.bf16.msra.mxu0 %v2669_v13 }
 0x322   : > { %v1566_v52 = vmax.f32 %v1558_v55, 0.0  ;;  %2671 = vmatprep.subr.bf16.mxu0 %v2845_v12 }
 0x323   : > { %v1565_v5 = vmax.f32 %v1557_v50, 0.0  ;;  %v2508_v6 = vpop.f32.mrb[22].mxu0  ;;  %2520 = vmatprep.mubr.msk.f32.mxu0 %vm1114_vm2, %v3389_v0 }
 0x324   : > { %v3395_v54 = vadd.f32 %v1566_v52, %v641_v2  ;;  %v1560_v56 = vadd.f32 %v2508_v6, %v2176_v32  ;;  %v1529_v58 = vpop.f32.mrb[23].mxu0  ;;  %2521 = vmatmul.mubr.msk.f32.gmra.mrb[26].mxu0 %vm1114_vm2, %v3385_v51 }
 0x325   : > { %v3399_v60 = vadd.f32 %v1565_v5, %v635_v59  ;;  %v1559_v1 = vadd.f32 %v2176_v32, %v1529_v58  ;;  %2673 = vmatpush3.bf16.msra.mxu0 %v2672_v15 }
 0x326   : > { %v1568_v4 = vmax.f32 %v1560_v56, 0.0 }
 0x327   : > { %v1567_v7 = vmax.f32 %v1559_v1, 0.0  ;;  %2523 = vmatprep.mubr.msk.f32.mxu0 %vm1114_vm2, %v3399_v60 }
 0x328   : > { %v3405_v8 = vadd.f32 %v1568_v4, %v653_v19  ;;  %2524 = vmatmul.mubr.msk.f32.gmra.mrb[28].mxu0 %vm1114_vm2, %v3395_v54 }
 0x329   : > { %v3409_v9 = vadd.f32 %v1567_v7, %v647_v11 }
 0x32b   : > { %2526 = vmatprep.mubr.msk.f32.mxu0 %vm1114_vm2, %v3409_v9 }
 0x32c   : > { %2527 = vmatmul.mubr.msk.f32.gmra.mrb[30].mxu0 %vm1114_vm2, %v3405_v8 }
 0x32d   : > { %2537 = vmatprep.mubr.msk.f32.mxu0 %vm2846_vm3, %v2844_v3 }
 0x3f3   : > { %v2519_v17 = vpop.f32.mrb[24].mxu0 }
 0x3f4   : > { %v1684_v18 = vadd.f32 %v2519_v17, %v2177_v16  ;;  %v1678_v20 = vpop.f32.mrb[25].mxu0 }
 0x3f5   : > { %v1679_v21 = vadd.f32 %v2177_v16, %v1678_v20 }
 0x3f6   : > { %v1724_v22 = vsel %vm1114_vm2, %v1684_v18, -inf }
 0x3f7   : > { %v1725_v23 = vrot.slane %v1724_v22, 4  ;;  %v1717_v24 = vsel %vm1114_vm2, %v1679_v21, -inf  ;;  %v2522_v25 = vpop.f32.mrb[26].mxu0 }
 0x3f8   : > { %v1718_v26 = vrot.slane %v1717_v24, 4  ;;  %v1694_v3 = vadd.f32 %v2522_v25, %v2177_v16  ;;  %v1688_v28 = vpop.f32.mrb[27].mxu0 }
 0x3f9   : > { %v1726_v29 = vmax.f32 %v1724_v22, %v1725_v23  ;;  %v1689_v30 = vadd.f32 %v2177_v16, %v1688_v28 }
 0x3fa   : > { %v1719_v31 = vmax.f32 %v1717_v24, %v1718_v26  ;;  %v1738_v32 = vsel %vm1114_vm2, %v1694_v3, -inf }
 0x3fb   : > { %v1727_v33 = vrot.slane %v1726_v29, 2  ;;  %v1739_v34 = vrot.slane %v1738_v32, 4  ;;  %v1731_v36 = vsel %vm1114_vm2, %v1689_v30, -inf  ;;  %v2525_v37 = vpop.f32.mrb[28].mxu0 }
 0x3fc   : > { %v1720_v38 = vrot.slane %v1719_v31, 2  ;;  %v1732_v39 = vrot.slane %v1731_v36, 4  ;;  %v3435_v40 = vadd.f32 %v2525_v37, %v2177_v16  ;;  %v1698_v41 = vpop.f32.mrb[29].mxu0 }
 0x3fd   : > { %v1728_v42 = vmax.f32 %v1726_v29, %v1727_v33  ;;  %v1740_v43 = vmax.f32 %v1738_v32, %v1739_v34  ;;  %v3437_v45 = vadd.f32 %v2177_v16, %v1698_v41 }
 0x3fe   : > { %v1721_v46 = vmax.f32 %v1719_v31, %v1720_v38  ;;  %v1733_v49 = vmax.f32 %v1731_v36, %v1732_v39  ;;  %v1752_v47 = vsel %vm1114_vm2, %v3435_v40, -inf }
 0x3ff   : > { %v1729_v53 = vrot.slane %v1728_v42, 1  ;;  %v1741_v57 = vrot.slane %v1740_v43, 2  ;;  %v1753_v61 = vrot.slane %v1752_v47, 4  ;;  %v1745_v62 = vsel %vm1114_vm2, %v3437_v45, -inf  ;;  %v2528_v55 = vpop.f32.mrb[30].mxu0 }
 0x400   : > { %v1722_v63 = vrot.slane %v1721_v46, 1  ;;  %v1734_v50 = vrot.slane %v1733_v49, 2  ;;  %v1746_v2 = vrot.slane %v1745_v62, 4  ;;  %v1714_v52 = vadd.f32 %v2528_v55, %v2177_v16  ;;  %v1708_v59 = vpop.f32.mrb[31].mxu0 }
 0x401   : > { %v1730_v5 = vmax.f32 %v1728_v42, %v1729_v53  ;;  %v1742_v6 = vmax.f32 %v1740_v43, %v1741_v57  ;;  %v1754_v56 = vmax.f32 %v1752_v47, %v1753_v61  ;;  %v3443_v58 = vadd.f32 %v2177_v16, %v1708_v59 }
 0x402   : > { %v1723_v1 = vmax.f32 %v1721_v46, %v1722_v63  ;;  %v1735_v19 = vmax.f32 %v1733_v49, %v1734_v50  ;;  %v1747_v4 = vmax.f32 %v1745_v62, %v1746_v2  ;;  %v1766_v11 = vsel %vm1114_vm2, %v1714_v52, -inf }
 0x403   : > { %v1774_v7 = vsub.f32 %v1684_v18, %v1730_v5  ;;  %v1743_v27 = vrot.slane %v1742_v6, 1  ;;  %v1755_v35 = vrot.slane %v1754_v56, 2  ;;  %v1767_v10 = vrot.slane %v1766_v11, 4 }
 0x404   : > { %v1773_v12 = vsub.f32 %v1679_v21, %v1723_v1  ;;  %v1736_v13 = vrot.slane %v1735_v19, 1  ;;  %v1748_v14 = vrot.slane %v1747_v4, 2  ;;  %v1759_v15 = vsel %vm1114_vm2, %v3443_v58, -inf }
 0x405   : > { %v1783_v17 = vmul.f32 1.442695, %v1774_v7  ;;  %v1744_v20 = vmax.f32 %v1742_v6, %v1743_v27  ;;  %v1756_v22 = vmax.f32 %v1754_v56, %v1755_v35  ;;  %v1768_v16 = vmax.f32 %v1766_v11, %v1767_v10 }
 0x406   : > { %v1781_v23 = vmul.f32 1.442695, %v1773_v12  ;;  %v1737_v24 = vmax.f32 %v1735_v19, %v1736_v13  ;;  %v1749_v25 = vmax.f32 %v1747_v4, %v1748_v14  ;;  %v1760_v26 = vrot.slane %v1759_v15, 4 }
 0x407   : > { %2748 = vpow2.f32 %v1783_v17  ;;  %v1776_v28 = vsub.f32 %v1694_v3, %v1744_v20  ;;  %v1757_v18 = vrot.slane %v1756_v22, 1  ;;  %v1769_v29 = vrot.slane %v1768_v16, 2 }
 0x408   : > { %2750 = vpow2.f32 %v1781_v23  ;;  %v1775_v31 = vsub.f32 %v1689_v30, %v1737_v24  ;;  %v1750_v21 = vrot.slane %v1749_v25, 1  ;;  %v1761_v38 = vmax.f32 %v1759_v15, %v1760_v26 }
 0x409   : > { %v1787_v32 = vmul.f32 1.442695, %v1776_v28  ;;  %v1758_v33 = vmax.f32 %v1756_v22, %v1757_v18  ;;  %v1770_v34 = vmax.f32 %v1768_v16, %v1769_v29 }
 0x40a   : > { %v1785_v36 = vmul.f32 1.442695, %v1775_v31  ;;  %v1751_v37 = vmax.f32 %v1749_v25, %v1750_v21  ;;  %v1762_v3 = vrot.slane %v1761_v38, 2 }
 0x40b   : > { %2752 = vpow2.f32 %v1787_v32  ;;  %v1771_v39 = vrot.slane %v1770_v34, 1  ;;  %v1778_v41 = vsub.f32 %v3435_v40, %v1758_v33 }
 0x40c   : > { %2754 = vpow2.f32 %v1785_v36  ;;  %v1777_v43 = vsub.f32 %v3437_v45, %v1751_v37  ;;  %v1763_v62 = vmax.f32 %v1761_v38, %v1762_v3 }
 0x40d   : > { %v1772_v42 = vmax.f32 %v1770_v34, %v1771_v39  ;;  %v1791_v49 = vmul.f32 1.442695, %v1778_v41 }
 0x40e   : > { %v1789_v61 = vmul.f32 1.442695, %v1777_v43  ;;  %v1764_v56 = vrot.slane %v1763_v62, 1 }
 0x40f   : > { %v1780_v46 = vsub.f32 %v1714_v52, %v1772_v42  ;;  %2756 = vpow2.f32 %v1791_v49 }
 0x410   : > { %2758 = vpow2.f32 %v1789_v61  ;;  %v1765_v22 = vmax.f32 %v1763_v62, %v1764_v56 }
 0x411   : > { %v2749_v47 = vpop.eup %2748  ;;  %v1795_v40 = vmul.f32 1.442695, %v1780_v46 }
 0x412   : > { %v2751_v30 = vpop.eup %2750  ;;  %v1798_v53 = vmul.f32 %v2749_v47, %v3377_v44  ;;  %v1868_v57 = vsel %vm1114_vm2, %v2749_v47, 0.0  ;;  %v1779_v37 = vsub.f32 %v3443_v58, %v1765_v22 }
 0x413   : > { %v1869_v55 = vrot.slane %v1868_v57, 4  ;;  %v1797_v63 = vmul.f32 %v2751_v30, %v3379_v48  ;;  %v1861_v50 = vsel %vm1114_vm2, %v2751_v30, 0.0  ;;  %2760 = vpow2.f32 %v1795_v40 }
 0x414   : > { %v1862_v2 = vrot.slane %v1861_v50, 4  ;;  %v1812_v52 = vsel %vm1114_vm2, %v1798_v53, 0.0  ;;  %v1793_v61 = vmul.f32 1.442695, %v1779_v37 }
 0x415   : > { %v2753_v45 = vpop.eup %2752  ;;  %v1870_v59 = vadd.f32 %v1869_v55, %v1868_v57  ;;  %v1805_v19 = vsel %vm1114_vm2, %v1797_v63, 0.0  ;;  %v1813_v48 = vrot.slane %v1812_v52, 4 }
 0x416   : > { %v2755_v5 = vpop.eup %2754  ;;  %v1863_v6 = vadd.f32 %v1862_v2, %v1861_v50  ;;  %v1882_v44 = vsel %vm1114_vm2, %v2753_v45, 0.0  ;;  %v1806_v12 = vrot.slane %v1805_v19, 4  ;;  %v1800_v17 = vmul.f32 %v2753_v45, %v3385_v51 }
 0x417   : > { %v1871_v1 = vrot.slane %v1870_v59, 2  ;;  %v1883_v4 = vrot.slane %v1882_v44, 4  ;;  %v1799_v7 = vmul.f32 %v2755_v5, %v3389_v0  ;;  %v1875_v27 = vsel %vm1114_vm2, %v2755_v5, 0.0 }
 0x418   : > { %v1864_v11 = vrot.slane %v1863_v6, 2  ;;  %v1876_v14 = vrot.slane %v1875_v27, 4  ;;  %v1814_v16 = vadd.f32 %v1813_v48, %v1812_v52  ;;  %v1807_v18 = vadd.f32 %v1806_v12, %v1805_v19 }
 0x419   : > { %v1872_v35 = vadd.f32 %v1871_v1, %v1870_v59  ;;  %v1884_v10 = vadd.f32 %v1883_v4, %v1882_v44  ;;  %v1819_v24 = vsel %vm1114_vm2, %v1799_v7, 0.0  ;;  %v2757_v0 = vpop.eup %2756  ;;  %v1826_v21 = vsel %vm1114_vm2, %v1800_v17, 0.0 }
 0x41a   : > { %v1865_v13 = vadd.f32 %v1864_v11, %v1863_v6  ;;  %v1877_v25 = vadd.f32 %v1876_v14, %v1875_v27  ;;  %v1820_v33 = vrot.slane %v1819_v24, 4  ;;  %v2759_v34 = vpop.eup %2758  ;;  %v1815_v51 = vrot.slane %v1814_v16, 2 }
 0x41b   : > { %v1873_v15 = vrot.slane %v1872_v35, 1  ;;  %v1885_v20 = vrot.slane %v1884_v10, 2  ;;  %v1896_v41 = vsel %vm1114_vm2, %v2757_v0, 0.0  ;;  %v1808_v42 = vrot.slane %v1807_v18, 2 }
 0x41c   : > { %v1866_v23 = vrot.slane %v1865_v13, 1  ;;  %v1878_v31 = vrot.slane %v1877_v25, 2  ;;  %v1827_v43 = vrot.slane %v1826_v21, 4  ;;  %v1897_v46 = vrot.slane %v1896_v41, 4 }
 0x41d   : > { %v1874_v26 = vadd.f32 %v1873_v15, %v1872_v35  ;;  %v1886_v28 = vadd.f32 %v1885_v20, %v1884_v10  ;;  %v3463_v38 = vpop.eup %2760  ;;  %v1821_v49 = vadd.f32 %v1820_v33, %v1819_v24  ;;  %v1889_v47 = vsel %vm1114_vm2, %v2759_v34, 0.0 }
 0x41e   : > { %v1867_v29 = vadd.f32 %v1866_v23, %v1865_v13  ;;  %v1879_v36 = vadd.f32 %v1878_v31, %v1877_v25  ;;  %v1816_v30 = vadd.f32 %v1815_v51, %v1814_v16  ;;  %v1898_v57 = vadd.f32 %v1897_v46, %v1896_v41 }
 0x41f   : > { %2762 = vrcp.f32 %v1874_v26  ;;  %v1887_v32 = vrot.slane %v1886_v28, 1  ;;  %v1802_v62 = vmul.f32 %v2757_v0, %v3395_v54  ;;  %v1801_v58 = vmul.f32 %v2759_v34, %v3399_v60 }
 0x420   : > { %2764 = vrcp.f32 %v1867_v29  ;;  %v1880_v3 = vrot.slane %v1879_v36, 1  ;;  %v1890_v55 = vrot.slane %v1889_v47, 4  ;;  %v1910_v63 = vsel %vm1114_vm2, %v3463_v38, 0.0 }
 0x421   : > { %v1888_v39 = vadd.f32 %v1887_v32, %v1886_v28  ;;  %v1809_v50 = vadd.f32 %v1808_v42, %v1807_v18  ;;  %v1828_v40 = vadd.f32 %v1827_v43, %v1826_v21  ;;  %v1899_v2 = vrot.slane %v1898_v57, 2 }
 0x422   : > { %v1881_v53 = vadd.f32 %v1880_v3, %v1879_v36  ;;  %v1822_v45 = vrot.slane %v1821_v49, 2  ;;  %v1891_v52 = vadd.f32 %v1890_v55, %v1889_v47  ;;  %v1911_v59 = vrot.slane %v1910_v63, 4 }
 0x423   : > { %2766 = vrcp.f32 %v1888_v39  ;;  %v1817_v5 = vrot.slane %v1816_v30, 1  ;;  %v1900_v6 = vadd.f32 %v1899_v2, %v1898_v57  ;;  %v1840_v54 = vsel %vm1114_vm2, %v1802_v62, 0.0 }
 0x424   : > { %2768 = vrcp.f32 %v1881_v53  ;;  %v1833_v60 = vsel %vm1114_vm2, %v1801_v58, 0.0  ;;  %v1892_v56 = vrot.slane %v1891_v52, 2  ;;  %v1912_v1 = vadd.f32 %v1911_v59, %v1910_v63 }
 0x425   : > { %2770 = vpow2.f32 %v1793_v61  ;;  %v1810_v48 = vrot.slane %v1809_v50, 1  ;;  %v1829_v11 = vrot.slane %v1828_v40, 2  ;;  %v1901_v7 = vrot.slane %v1900_v6, 1 }
 0x426   : > { %v1823_v35 = vadd.f32 %v1822_v45, %v1821_v49  ;;  %v1893_v10 = vadd.f32 %v1892_v56, %v1891_v52  ;;  %v1913_v12 = vrot.slane %v1912_v1, 2  ;;  %v1841_v14 = vrot.slane %v1840_v54, 4 }
 0x427   : > { %v1902_v15 = vadd.f32 %v1901_v7, %v1900_v6  ;;  %v1834_v17 = vrot.slane %v1833_v60, 4  ;;  %v1818_v22 = vadd.f32 %v1817_v5, %v1816_v30  ;;  %v1830_v28 = vadd.f32 %v1829_v11, %v1828_v40 }
 0x428   : > { %v1894_v23 = vrot.slane %v1893_v10, 1  ;;  %v1914_v24 = vadd.f32 %v1913_v12, %v1912_v1  ;;  %v1824_v31 = vrot.slane %v1823_v35, 1  ;;  %v1842_v34 = vadd.f32 %v1841_v14, %v1840_v54 }
 0x429   : > { %v2763_v44 = vpop.eup %2762  ;;  %2772 = vrcp.f32 %v1902_v15  ;;  %v1835_v51 = vadd.f32 %v1834_v17, %v1833_v60  ;;  %v1831_v43 = vrot.slane %v1830_v28, 1 }
 0x42a   : > { %v2765_v19 = vpop.eup %2764  ;;  %v1926_v4 = vmul.f32 %v2763_v44, %v1874_v26  ;;  %v1811_v26 = vadd.f32 %v1810_v48, %v1809_v50  ;;  %v1915_v41 = vrot.slane %v1914_v24, 1  ;;  %v1825_v62 = vadd.f32 %v1824_v31, %v1823_v35 }
 0x42b   : > { %v1925_v27 = vmul.f32 %v2765_v19, %v1867_v29  ;;  %v1895_v29 = vadd.f32 %v1894_v23, %v1893_v10  ;;  %v1836_v47 = vrot.slane %v1835_v51, 2  ;;  %v1832_v63 = vadd.f32 %v1831_v43, %v1830_v28 }
 0x42c   : > { %v1934_v13 = vsub.f32 2.0, %v1926_v4  ;;  %v1916_v55 = vadd.f32 %v1915_v41, %v1914_v24 }
 0x42d   : > { %v2767_v20 = vpop.eup %2766  ;;  %v1933_v16 = vsub.f32 2.0, %v1925_v27  ;;  %2774 = vrcp.f32 %v1895_v29 }
 0x42e   : > { %v1942_v25 = vmul.f32 %v2763_v44, %v1934_v13  ;;  %v1928_v0 = vmul.f32 %v2767_v20, %v1888_v39  ;;  %v2769_v21 = vpop.eup %2768  ;;  %v1804_v39 = vmul.f32 %v3463_v38, %v3405_v8  ;;  %v1837_v38 = vadd.f32 %v1836_v47, %v1835_v51 }
 0x42f   : > { %v1941_v18 = vmul.f32 %v2765_v19, %v1933_v16  ;;  %v1927_v37 = vmul.f32 %v2769_v21, %v1881_v53  ;;  %v2771_v42 = vpop.eup %2770  ;;  %v1843_v53 = vrot.slane %v1842_v34, 2  ;;  %2776 = vrcp.f32 %v1916_v55 }
 0x430   : > { %v1950_v32 = vmul.f32 %v1942_v25, %v1818_v22  ;;  %v1936_v33 = vsub.f32 2.0, %v1928_v0  ;;  %v1903_v46 = vsel %vm1114_vm2, %v2771_v42, 0.0  ;;  %v1803_v30 = vmul.f32 %v2771_v42, %v3409_v9 }
 0x431   : > { %v1949_v36 = vmul.f32 %v1941_v18, %v1811_v26  ;;  %v1935_v3 = vsub.f32 2.0, %v1927_v37  ;;  %v1904_v57 = vrot.slane %v1903_v46, 4  ;;  %v1854_v2 = vsel %vm1114_vm2, %v1804_v39, 0.0 }
 0x432   : > { %v1944_v61 = vmul.f32 %v2767_v20, %v1936_v33  ;;  %v1847_v45 = vsel %vm1114_vm2, %v1803_v30, 0.0  ;;  %v1844_v9 = vadd.f32 %v1843_v53, %v1842_v34  ;;  %v1838_v19 = vrot.slane %v1837_v38, 1 }
 0x433   : > { %v1977_v49 = vsel %vm1976_vm4, %v1950_v32, %v1949_v36  ;;  %v1943_v58 = vmul.f32 %v2769_v21, %v1935_v3  ;;  %v1905_v50 = vadd.f32 %v1904_v57, %v1903_v46  ;;  %v2773_v8 = vpop.eup %2772  ;;  %v1848_v56 = vrot.slane %v1847_v45, 4  ;;  %v2186_v46 = vld [vmem:[%s3546_s14] ss:$0 sm:$0xff] }
 0x434   : > { %v1952_v59 = vmul.f32 %v1944_v61, %v1832_v63  ;;  %v1930_v5 = vmul.f32 %v2773_v8, %v1902_v15  ;;  %v1855_v48 = vrot.slane %v1854_v2, 4  ;;  %v1845_v7 = vrot.slane %v1844_v9, 1 }
 0x435   : > { %v1951_v40 = vmul.f32 %v1943_v58, %v1825_v62  ;;  %v1906_v52 = vrot.slane %v1905_v50, 2  ;;  %v1849_v10 = vadd.f32 %v1848_v56, %v1847_v45  ;;  %v1839_v13 = vadd.f32 %v1838_v19, %v1837_v38 }
 0x436   : > { %v1938_v1 = vsub.f32 2.0, %v1930_v5  ;;  %v1856_v14 = vadd.f32 %v1855_v48, %v1854_v2  ;;  %v1846_v17 = vadd.f32 %v1845_v7, %v1844_v9 }
 0x437   : > { %v1979_v6 = vsel %vm1978_vm5, %v1951_v40, %v1977_v49  ;;  %v1907_v44 = vadd.f32 %v1906_v52, %v1905_v50  ;;  %v2775_v60 = vpop.eup %2774  ;;  %v1850_v16 = vrot.slane %v1849_v10, 2 }
 0x438   : > { %v1981_v54 = vsel %vm1980_vm6, %v1952_v59, %v1979_v6  ;;  %v1929_v4 = vmul.f32 %v2775_v60, %v1895_v29  ;;  %v1946_v12 = vmul.f32 %v2773_v8, %v1938_v1  ;;  %v1857_v24 = vrot.slane %v1856_v14, 2 }
 0x439   : > { %v1908_v11 = vrot.slane %v1907_v44, 1  ;;  %v2777_v22 = vpop.eup %2776  ;;  %v1851_v26 = vadd.f32 %v1850_v16, %v1849_v10 }
 0x43a   : > { %v1937_v27 = vsub.f32 2.0, %v1929_v4  ;;  %v1954_v23 = vmul.f32 %v1946_v12, %v1846_v17  ;;  %v1932_v0 = vmul.f32 %v2777_v22, %v1916_v55  ;;  %v1858_v18 = vadd.f32 %v1857_v24, %v1856_v14 }
 0x43b   : > { %v1909_v35 = vadd.f32 %v1908_v11, %v1907_v44  ;;  %v1852_v21 = vrot.slane %v1851_v26, 1 }
 0x43c   : > { %v1945_v15 = vmul.f32 %v2775_v60, %v1937_v27  ;;  %v1940_v29 = vsub.f32 2.0, %v1932_v0  ;;  %v1859_v33 = vrot.slane %v1858_v18, 1 }
 0x43d   : > { %2778 = vrcp.f32 %v1909_v35  ;;  %v1853_v36 = vadd.f32 %v1852_v21, %v1851_v26 }
 0x43e   : > { %v1953_v20 = vmul.f32 %v1945_v15, %v1839_v13  ;;  %v1948_v51 = vmul.f32 %v2777_v22, %v1940_v29  ;;  %v1860_v41 = vadd.f32 %v1859_v33, %v1858_v18 }
 0x440   : > { %v1983_v25 = vsel %vm1982_vm7, %v1953_v20, %v1981_v54  ;;  %v1956_v43 = vmul.f32 %v1948_v51, %v1860_v41 }
 0x441   : > { %v1985_v28 = vsel %vm1984_vm8, %v1954_v23, %v1983_v25 }
 0x447   : > { %v2779_v31 = vpop.eup %2778 }
 0x448   : > { %v1931_v32 = vmul.f32 %v2779_v31, %v1909_v35 }
 0x44a   : > { %v1939_v34 = vsub.f32 2.0, %v1931_v32 }
 0x44c   : > { %v1947_v37 = vmul.f32 %v2779_v31, %v1939_v34 }
 0x44e   : > { %v1955_v42 = vmul.f32 %v1947_v37, %v1853_v36 }
 0x450   : > { %v1987_v3 = vsel %vm1986_vm9, %v1955_v42, %v1985_v28 }
 0x451   : > { %v1989_v39 = vsel %vm1988_vm10, %v1956_v43, %v1987_v3 }
 0x452   : > { %2538 = vmatmul.mubr.msk.f32.vlgmr.msra.gmra.mrb[32].mxu0 %vm1114_vm2, %v1989_v39 }
 0x525   : > { %v2058_v49 = vpop.f32.mrb[32].mxu0 }
 0x526   : > { %v2059_v47 = vadd.f32 %v2186_v46, %v2058_v49  ;;  %v2539_v30 = vpop.f32.mrb[33].mxu0 }
 0x528   : > { %2062 = vst.msk [vmem:[%s488_s23] sm:$0xff] %vm1114_vm2, %v2059_v47 }
 0x529   : > { %2793 = shalt.err (!%p2790_p3)
}
 0x52a   : > { %s2794_s20 = scalar_lea.hbm %s3489_s16, 128  ;;  %s2798_s27 = scalar_lea.hbm %s3547_s15, 256 }
 0x52b   : > { %p2795_p4 = scmp.ne.s32.totalorder %s3489_s16, %s2794_s20  ;;  %p2799_p9 = scmp.lt.u32.totalorder %s3489_s16, %s3547_s15 }
 0x52c   : > { %p2800_p10 = scmp.lt.u32.totalorder %s2798_s27, %s2794_s20  ;;  %p2802_p12 = scmp.lt.u32.totalorder %s2794_s20, %s3489_s16 }
 0x52d   : > { %p2796_p7 = pnand %p2795_p4, %p2966_p5 }
 0x52e   : > { %p2801_p11 = por %p2800_p10, %p2799_p9 }
 0x52f   : > { %p2797_p8 = pneg %p2796_p7 }
 0x530   : > { %p2803_p13 = por %p2802_p12, %p2801_p11 }
 0x532   : > { %p2804_p0 = pnand %p2803_p13, %p2797_p8 }
 0x534   : > { %2807 = shalt.err (!%p2804_p0)
}
 0x535   : > { %2706 = dma.vmem_to_hbm [thread:$0]  (%p2966_p5), %s3491_s26, 128, %s3489_s16, %s2064_s1  }
 0x536 PF: > { %p2712_p1 = scmp.ge.s32.totalorder %s2842_s21, 2  ;;  %s2089_s17 = sand.u32 1, %s2830_s18  }
 0x537   : > { %s2090_s29 = scalar_lea.sflag [#allocation5], %s2089_s17 }
 0x538   : > { %p2709_p2 = pnand %p2712_p1, %p2970_p6 }
 0x53a   : > { %2825 = dma.done.wait (!%p2709_p2), %s2090_s29, 128  }
 0x53b   : > { %2827 = vsyncadd (!%p2709_p2), %s2090_s29, 4294967168  ;;  %s3561_s21 = sld [smem:[#allocation8_spill]]  ;;  %s3562_s20 = sld [smem:[#allocation7_spill]] }
 0x53c   : > { %s3563_s25 = sld [smem:[#allocation9_spill]]  ;;  %s3564_s18 = smov %s2834_s19 }
 0x541   : > { %p25_p3 = scmp.ge.s32.totalorder %s3561_s21, 4   ;;  %s3565_s19 = smov %s3562_s20 }
 0x542   : > { %s3566_s20 = smov %s3563_s25 }
 0x543   :  { %27 = sbr.rel (!%p25_p3) target bundleno = 5 (0x5), region = 115 }
 0x54a   :  { %2095 = vsyncpa [#allocation5], 1 }
 0x54b   :  { %2097 = vsyncpa [#allocation5 + $0x1], 1 }

</bundles_post_ra>
